<compile_context>
chip_gen: v7x
topology: tpu7x:2x2x1
jax: 0.10.0
libtpu: 0.0.40
codegen_flags: <defaults>
</compile_context>

<pallas_src>
import functools

import jax
import jax.numpy as jnp
from jax.experimental import pallas as pl
from jax.experimental.pallas import tpu as pltpu  # noqa: F401  (kept for TPU-specific tuning hooks)


def _round_up(x, m):
    return ((x + m - 1) // m) * m


# ---------------------------------------------------------------------------
# Kernel: the full T-step recurrence in one invocation.
# ---------------------------------------------------------------------------
def rnn_seq_kernel(T, Bp,
                   cat_ref,      # (Bp, Cp)    bf16  category features
                   h0_ref,       # (Bp, Hp)    f32   initial hidden
                   x_ref,        # (T*Bp, Ip)  bf16  all inputs, time-flattened
                   w1c_ref,      # (Cp, N)     bf16  fused [W_ih | W_io] rows for category
                   w1i_ref,      # (Ip, N)     bf16  ... rows for input
                   w1h_ref,      # (Hp, N)     bf16  ... rows for hidden
                   b1_ref,       # (1, N)      f32   fused [b_ih | b_io]
                   w2_ref,       # (N, Op)     bf16  Linear_oo weight (padded)
                   b2_ref,       # (1, Op)     f32   b_oo with -1e30 baked into padded lanes
                   out_ref,      # (T, Bp, Op) f32   per-step log-probs
                   hfin_ref):    # (Bp, Hp)    f32   final hidden
    hp = h0_ref.shape[-1]

    # --- One-time work, off the serial chain -------------------------------
    # Category contribution + fused layer-1 bias (constant over the sequence).
    cb = (jnp.dot(cat_ref[...], w1c_ref[...], preferred_element_type=jnp.float32)
          + b1_ref[...])
    # Batched input projections for ALL T steps in a single MXU dot.
    pre = jnp.dot(x_ref[...], w1i_ref[...], preferred_element_type=jnp.float32)

    w1h = w1h_ref[...]
    w2 = w2_ref[...]
    b2 = b2_ref[...]          # padded logit lanes carry -1e30 (mask hoisted out of the loop)

    # --- Serial recurrence (fully unrolled; T is small & static) -----------
    h = h0_ref[...]           # f32 carry; cast to bf16 only at the MXU operand
    for t in range(T):
        # Fused layer 1: y1 = [hidden_new | out1]; only h @ W1h sits on the serial chain.
        y1 = (pre[t * Bp:(t + 1) * Bp] + cb
              + jnp.dot(h.astype(w1h.dtype), w1h, preferred_element_type=jnp.float32))
        h = y1[:, :hp]        # vreg-aligned lane slice (Hp = 128)

        # Layer 2: Linear_oo(cat([hidden_new, out1])) == y1 @ W2 + b2 (W2 padded to match).
        o2 = jnp.dot(y1.astype(w2.dtype), w2, preferred_element_type=jnp.float32) + b2

        # TODO(synk): training-mode Dropout(p=0.1) omitted; eval-mode (identity) semantics.

        # Numerically stable LogSoftmax; padded lanes hold -1e30 so exp underflows to 0.
        m = jnp.max(o2, axis=1, keepdims=True)
        z = o2 - m
        lse = jnp.log(jnp.sum(jnp.exp(z), axis=1, keepdims=True))
        out_ref[t] = z - lse

    hfin_ref[...] = h


# ---------------------------------------------------------------------------
# Wrappers
# ---------------------------------------------------------------------------
def rnn_sequence(category_vec, input_seq, hidden0, kparams):
    """Run T recurrent steps in a single pallas_call.

    category_vec: (B, C)   input_seq: (T, B, I)   hidden0: (B, H)
    returns: (out_seq (T, B, O) log-probs, final hidden (B, H))
    """
    C, I, H, O, Cp, Ip, Hp, Op = kparams["dims"]
    T, B = input_seq.shape[0], input_seq.shape[1]
    Bp = _round_up(max(B, 8), 8)

    # Zero-pad batch (sublane) and feature (lane) dims; padding is mathematically inert.
    cat_p = jnp.zeros((Bp, Cp), jnp.bfloat16).at[:B, :C].set(category_vec.astype(jnp.bfloat16))
    x_p = jnp.zeros((T, Bp, Ip), jnp.bfloat16).at[:, :B, :I].set(input_seq.astype(jnp.bfloat16))
    x_flat = x_p.reshape(T * Bp, Ip)          # time-flattened for the one batched pre-projection
    h0_p = jnp.zeros((Bp, Hp), jnp.float32).at[:B, :H].set(hidden0)

    kernel = functools.partial(rnn_seq_kernel, T, Bp)

    # No grid: everything (inputs, weights, hidden carry) is VMEM-resident for the whole
    # sequence (~0.3 MB total), so a single invocation with default full-array blocks is
    # both the simplest and the fastest structure at these sizes.
    # (For very long T one would time-chunk with grid=(T//Tc,) instead.)
    out_seq_p, hid_p = pl.pallas_call(
        kernel,
        out_shape=(jax.ShapeDtypeStruct((T, Bp, Op), jnp.float32),
                   jax.ShapeDtypeStruct((Bp, Hp), jnp.float32)),
    )(cat_p, h0_p, x_flat,
      kparams["w1c"], kparams["w1i"], kparams["w1h"], kparams["b1"],
      kparams["w2"], kparams["b2"])

    return out_seq_p[:, :B, :O], hid_p[:B, :H]


def rnn_forward(category_vec, input_vec, hidden, kparams):
    """Single-step forward matching the PyTorch module signature."""
    out_seq, hid = rnn_sequence(category_vec, input_vec[None], hidden, kparams)
    return out_seq[0], hid


# ---------------------------------------------------------------------------
# Parameters
# ---------------------------------------------------------------------------
def init_params(key, num_categories, input_size, hidden_size, output_size):
    """PyTorch nn.Linear-style init, weights stored (in, out) for x @ W + b."""
    d1 = num_categories + input_size + hidden_size
    d2 = hidden_size + output_size
    ks = jax.random.split(key, 6)

    def u(k, shape, fan_in):
        b = float(1.0 / (fan_in ** 0.5))
        return jax.random.uniform(k, shape, jnp.float32, -b, b)

    return {
        "w_ih": u(ks[0], (d1, hidden_size), d1),
        "b_ih": u(ks[1], (hidden_size,), d1),
        "w_io": u(ks[2], (d1, output_size), d1),
        "b_io": u(ks[3], (output_size,), d1),
        "w_oo": u(ks[4], (d2, output_size), d2),
        "b_oo": u(ks[5], (output_size,), d2),
    }


def prepare_params(params, C, I, H, O):
    """Fuse (W_ih | W_io), split along the concat input dim, zero-pad to lane/sublane
    friendly shapes, bake the padded-lane log-softmax mask into b2, and cast the MXU
    operands to bf16.  Column layout of the fused layer-1 output: [hidden 0:Hp | out Hp:Hp+Op]."""
    Cp = _round_up(max(C, 8), 8)
    Ip = _round_up(max(I, 8), 8)
    Hp = _round_up(H, 128)
    Op = _round_up(O, 128)
    N = Hp + Op

    w_ih, b_ih = params["w_ih"], params["b_ih"]
    w_io, b_io = params["w_io"], params["b_io"]
    w_oo, b_oo = params["w_oo"], params["b_oo"]

    def fused_rows(w_ih_rows, w_io_rows, nrows_pad):
        r = w_ih_rows.shape[0]
        w = jnp.zeros((nrows_pad, N), jnp.float32)
        w = w.at[:r, :H].set(w_ih_rows)
        w = w.at[:r, Hp:Hp + O].set(w_io_rows)
        return w

    w1c = fused_rows(w_ih[:C], w_io[:C], Cp)
    w1i = fused_rows(w_ih[C:C + I], w_io[C:C + I], Ip)
    w1h = fused_rows(w_ih[C + I:], w_io[C + I:], Hp)
    b1 = (jnp.zeros((1, N), jnp.float32)
          .at[0, :H].set(b_ih)
          .at[0, Hp:Hp + O].set(b_io))
    w2 = (jnp.zeros((N, Op), jnp.float32)
          .at[:H, :O].set(w_oo[:H])
          .at[Hp:Hp + O, :O].set(w_oo[H:]))
    # Mask hoisted out of the kernel: padded w2 columns are zero, so setting the padded
    # lanes of b2 to -1e30 makes o2's padded lanes exactly -1e30 -> exp() underflows to 0.
    b2 = jnp.full((1, Op), -1e30, jnp.float32).at[0, :O].set(b_oo)

    bf16 = jnp.bfloat16
    return {"w1c": w1c.astype(bf16), "w1i": w1i.astype(bf16), "w1h": w1h.astype(bf16),
            "b1": b1, "w2": w2.astype(bf16), "b2": b2,
            "dims": (C, I, H, O, Cp, Ip, Hp, Op)}


# ---------------------------------------------------------------------------
# Reference (pure f32 JAX, eval-mode forward of the PyTorch module)
# ---------------------------------------------------------------------------
def reference_forward(category_vec, input_vec, hidden, p):
    ic = jnp.concatenate([category_vec, input_vec, hidden], axis=1)
    h = ic @ p["w_ih"] + p["b_ih"]
    o1 = ic @ p["w_io"] + p["b_io"]
    o2 = jnp.concatenate([h, o1], axis=1) @ p["w_oo"] + p["b_oo"]
    return jax.nn.log_softmax(o2, axis=1), h


if __name__ == "__main__":
    num_categories, input_size, hidden_size, output_size = 4, 16, 32, 16
    batch, seq_len = 2, 8

    key = jax.random.PRNGKey(0)
    kc, kx, kp = jax.random.split(key, 3)

    category_vec = jax.random.normal(kc, (batch, num_categories), jnp.float32)
    input_seq = jax.random.normal(kx, (seq_len, batch, input_size), jnp.float32)
    hidden0 = jnp.zeros((batch, hidden_size), jnp.float32)   # RNN.init_hidden()

    params = init_params(kp, num_categories, input_size, hidden_size, output_size)
    kparams = prepare_params(params, num_categories, input_size, hidden_size, output_size)

    # Fused-sequence kernel: T recurrent steps in one pallas_call.
    out_seq, hid_final = rnn_sequence(category_vec, input_seq, hidden0, kparams)
    jax.block_until_ready((out_seq, hid_final))

    # Pure-JAX f32 per-step reference.
    h_ref = hidden0
    ref_outs = []
    for t in range(seq_len):
        o_ref, h_ref = reference_forward(category_vec, input_seq[t], h_ref, params)
        ref_outs.append(o_ref)
    ref_out_seq = jnp.stack(ref_outs, axis=0)

    # Tolerance 1e-2: the kernel uses bf16 MXU operands with f32 accumulation (per perf
    # guidance); the resulting quantization error vs. the pure-f32 reference is a few e-3.
    TOL = 1e-2
    assert jnp.allclose(out_seq, ref_out_seq, atol=TOL, rtol=TOL), "sequence output mismatch"
    assert jnp.allclose(hid_final, h_ref, atol=TOL, rtol=TOL), "final hidden mismatch"

    # Single-step entry matching the module's forward(category, input, hidden).
    out1, hid1 = rnn_forward(category_vec, input_seq[0], hidden0, kparams)
    ref_o1, ref_h1 = reference_forward(category_vec, input_seq[0], hidden0, params)
    assert jnp.allclose(out1, ref_o1, atol=TOL, rtol=TOL), "single-step output mismatch"
    assert jnp.allclose(hid1, ref_h1, atol=TOL, rtol=TOL), "single-step hidden mismatch"

    print("KERNEL_OK")
</pallas_src>

<mosaic_0001>
module attributes {stable_mosaic.version = 11 : i64} {
  func.func @rnn_seq_kernel(%arg0: memref<8x8xbf16, #tpu.memory_space<vmem>>, %arg1: memref<8x128xf32, #tpu.memory_space<vmem>>, %arg2: memref<64x16xbf16, #tpu.memory_space<vmem>>, %arg3: memref<8x256xbf16, #tpu.memory_space<vmem>>, %arg4: memref<16x256xbf16, #tpu.memory_space<vmem>>, %arg5: memref<128x256xbf16, #tpu.memory_space<vmem>>, %arg6: memref<1x256xf32, #tpu.memory_space<vmem>>, %arg7: memref<256x128xbf16, #tpu.memory_space<vmem>>, %arg8: memref<1x128xf32, #tpu.memory_space<vmem>>, %arg9: memref<8x8x128xf32, #tpu.memory_space<vmem>>, %arg10: memref<8x128xf32, #tpu.memory_space<vmem>>) attributes {dimension_semantics = [], scalar_prefetch = 0 : i64, scratch_operands = 0 : i64, tpu.core_type = #tpu.core_type<tc>} {
    %c0 = arith.constant 0 : index
    %c0_0 = arith.constant 0 : index
    %0 = vector.load %arg0[%c0, %c0_0] : memref<8x8xbf16, #tpu.memory_space<vmem>>, vector<8x8xbf16>
    %c0_1 = arith.constant 0 : index
    %c0_2 = arith.constant 0 : index
    %1 = vector.load %arg3[%c0_1, %c0_2] : memref<8x256xbf16, #tpu.memory_space<vmem>>, vector<8x256xbf16>
    %cst = arith.constant dense<0.000000e+00> : vector<8x256xf32>
    %2 = tpu.matmul %0, %1, %cst {dimension_numbers = #tpu.dot_dimension_numbers<[1], [0], [0], [1], [0, 0, 1, 1], [], []>} : vector<8x8xbf16>, vector<8x256xbf16>, vector<8x256xf32> -> vector<8x256xf32>
    %c0_3 = arith.constant 0 : index
    %c0_4 = arith.constant 0 : index
    %3 = vector.load %arg6[%c0_3, %c0_4] : memref<1x256xf32, #tpu.memory_space<vmem>>, vector<1x256xf32>
    %4 = vector.broadcast %3 : vector<1x256xf32> to vector<8x256xf32>
    %5 = arith.addf %2, %4 : vector<8x256xf32>
    %c0_5 = arith.constant 0 : index
    %c0_6 = arith.constant 0 : index
    %6 = vector.load %arg2[%c0_5, %c0_6] : memref<64x16xbf16, #tpu.memory_space<vmem>>, vector<64x16xbf16>
    %c0_7 = arith.constant 0 : index
    %c0_8 = arith.constant 0 : index
    %7 = vector.load %arg4[%c0_7, %c0_8] : memref<16x256xbf16, #tpu.memory_space<vmem>>, vector<16x256xbf16>
    %cst_9 = arith.constant dense<0.000000e+00> : vector<64x256xf32>
    %8 = tpu.matmul %6, %7, %cst_9 {dimension_numbers = #tpu.dot_dimension_numbers<[1], [0], [0], [1], [0, 0, 1, 1], [], []>} : vector<64x16xbf16>, vector<16x256xbf16>, vector<64x256xf32> -> vector<64x256xf32>
    %c0_10 = arith.constant 0 : index
    %c0_11 = arith.constant 0 : index
    %9 = vector.load %arg5[%c0_10, %c0_11] : memref<128x256xbf16, #tpu.memory_space<vmem>>, vector<128x256xbf16>
    %c0_12 = arith.constant 0 : index
    %c0_13 = arith.constant 0 : index
    %10 = vector.load %arg7[%c0_12, %c0_13] : memref<256x128xbf16, #tpu.memory_space<vmem>>, vector<256x128xbf16>
    %c0_14 = arith.constant 0 : index
    %c0_15 = arith.constant 0 : index
    %11 = vector.load %arg8[%c0_14, %c0_15] : memref<1x128xf32, #tpu.memory_space<vmem>>, vector<1x128xf32>
    %c0_16 = arith.constant 0 : index
    %c0_17 = arith.constant 0 : index
    %12 = vector.load %arg1[%c0_16, %c0_17] : memref<8x128xf32, #tpu.memory_space<vmem>>, vector<8x128xf32>
    %13 = vector.extract_strided_slice %8 {offsets = [0, 0], sizes = [8, 256], strides = [1, 1]} : vector<64x256xf32> to vector<8x256xf32>
    %14 = arith.addf %13, %5 : vector<8x256xf32>
    %15 = arith.truncf %12 : vector<8x128xf32> to vector<8x128xbf16>
    %cst_18 = arith.constant dense<0.000000e+00> : vector<8x256xf32>
    %16 = tpu.matmul %15, %9, %cst_18 {dimension_numbers = #tpu.dot_dimension_numbers<[1], [0], [0], [1], [0, 0, 1, 1], [], []>} : vector<8x128xbf16>, vector<128x256xbf16>, vector<8x256xf32> -> vector<8x256xf32>
    %17 = arith.addf %14, %16 : vector<8x256xf32>
    %18 = vector.extract_strided_slice %17 {offsets = [0, 0], sizes = [8, 128], strides = [1, 1]} : vector<8x256xf32> to vector<8x128xf32>
    %19 = arith.truncf %17 : vector<8x256xf32> to vector<8x256xbf16>
    %cst_19 = arith.constant dense<0.000000e+00> : vector<8x128xf32>
    %20 = tpu.matmul %19, %10, %cst_19 {dimension_numbers = #tpu.dot_dimension_numbers<[1], [0], [0], [1], [0, 0, 1, 1], [], []>} : vector<8x256xbf16>, vector<256x128xbf16>, vector<8x128xf32> -> vector<8x128xf32>
    %21 = vector.broadcast %11 : vector<1x128xf32> to vector<8x128xf32>
    %22 = arith.addf %20, %21 : vector<8x128xf32>
    %cst_20 = arith.constant dense<0xFF800000> : vector<8xf32>
    %23 = vector.multi_reduction <maximumf>, %22, %cst_20 [1] : vector<8x128xf32> to vector<8xf32>
    %24 = vector.shape_cast %23 : vector<8xf32> to vector<8x1xf32>
    %25 = vector.broadcast %24 : vector<8x1xf32> to vector<8x128xf32>
    %26 = arith.subf %22, %25 : vector<8x128xf32>
    %27 = math.exp %26 : vector<8x128xf32>
    %cst_21 = arith.constant dense<0.000000e+00> : vector<8xf32>
    %28 = vector.multi_reduction <add>, %27, %cst_21 [1] : vector<8x128xf32> to vector<8xf32>
    %29 = vector.shape_cast %28 : vector<8xf32> to vector<8x1xf32>
    %30 = math.log %29 : vector<8x1xf32>
    %31 = vector.broadcast %30 : vector<8x1xf32> to vector<8x128xf32>
    %32 = arith.subf %26, %31 : vector<8x128xf32>
    %c0_22 = arith.constant 0 : index
    %c0_23 = arith.constant 0 : index
    %c0_24 = arith.constant 0 : index
    %33 = vector.load %arg9[%c0_22, %c0_23, %c0_24] : memref<8x8x128xf32, #tpu.memory_space<vmem>>, vector<1x8x128xf32>
    %34 = vector.shape_cast %33 : vector<1x8x128xf32> to vector<8x128xf32>
    %35 = vector.shape_cast %32 : vector<8x128xf32> to vector<1x8x128xf32>
    tpu.vector_store %arg9[%c0_22, %c0_23, %c0_24], %35 {strides = array<i32>} : memref<8x8x128xf32, #tpu.memory_space<vmem>>, vector<1x8x128xf32>,
    %36 = vector.extract_strided_slice %8 {offsets = [8, 0], sizes = [8, 256], strides = [1, 1]} : vector<64x256xf32> to vector<8x256xf32>
    %37 = arith.addf %36, %5 : vector<8x256xf32>
    %38 = arith.truncf %18 : vector<8x128xf32> to vector<8x128xbf16>
    %cst_25 = arith.constant dense<0.000000e+00> : vector<8x256xf32>
    %39 = tpu.matmul %38, %9, %cst_25 {dimension_numbers = #tpu.dot_dimension_numbers<[1], [0], [0], [1], [0, 0, 1, 1], [], []>} : vector<8x128xbf16>, vector<128x256xbf16>, vector<8x256xf32> -> vector<8x256xf32>
    %40 = arith.addf %37, %39 : vector<8x256xf32>
    %41 = vector.extract_strided_slice %40 {offsets = [0, 0], sizes = [8, 128], strides = [1, 1]} : vector<8x256xf32> to vector<8x128xf32>
    %42 = arith.truncf %40 : vector<8x256xf32> to vector<8x256xbf16>
    %cst_26 = arith.constant dense<0.000000e+00> : vector<8x128xf32>
    %43 = tpu.matmul %42, %10, %cst_26 {dimension_numbers = #tpu.dot_dimension_numbers<[1], [0], [0], [1], [0, 0, 1, 1], [], []>} : vector<8x256xbf16>, vector<256x128xbf16>, vector<8x128xf32> -> vector<8x128xf32>
    %44 = vector.broadcast %11 : vector<1x128xf32> to vector<8x128xf32>
    %45 = arith.addf %43, %44 : vector<8x128xf32>
    %cst_27 = arith.constant dense<0xFF800000> : vector<8xf32>
    %46 = vector.multi_reduction <maximumf>, %45, %cst_27 [1] : vector<8x128xf32> to vector<8xf32>
    %47 = vector.shape_cast %46 : vector<8xf32> to vector<8x1xf32>
    %48 = vector.broadcast %47 : vector<8x1xf32> to vector<8x128xf32>
    %49 = arith.subf %45, %48 : vector<8x128xf32>
    %50 = math.exp %49 : vector<8x128xf32>
    %cst_28 = arith.constant dense<0.000000e+00> : vector<8xf32>
    %51 = vector.multi_reduction <add>, %50, %cst_28 [1] : vector<8x128xf32> to vector<8xf32>
    %52 = vector.shape_cast %51 : vector<8xf32> to vector<8x1xf32>
    %53 = math.log %52 : vector<8x1xf32>
    %54 = vector.broadcast %53 : vector<8x1xf32> to vector<8x128xf32>
    %55 = arith.subf %49, %54 : vector<8x128xf32>
    %c1 = arith.constant 1 : index
    %c0_29 = arith.constant 0 : index
    %c0_30 = arith.constant 0 : index
    %56 = vector.load %arg9[%c1, %c0_29, %c0_30] : memref<8x8x128xf32, #tpu.memory_space<vmem>>, vector<1x8x128xf32>
    %57 = vector.shape_cast %56 : vector<1x8x128xf32> to vector<8x128xf32>
    %58 = vector.shape_cast %55 : vector<8x128xf32> to vector<1x8x128xf32>
    tpu.vector_store %arg9[%c1, %c0_29, %c0_30], %58 {strides = array<i32>} : memref<8x8x128xf32, #tpu.memory_space<vmem>>, vector<1x8x128xf32>,
    %59 = vector.extract_strided_slice %8 {offsets = [16, 0], sizes = [8, 256], strides = [1, 1]} : vector<64x256xf32> to vector<8x256xf32>
    %60 = arith.addf %59, %5 : vector<8x256xf32>
    %61 = arith.truncf %41 : vector<8x128xf32> to vector<8x128xbf16>
    %cst_31 = arith.constant dense<0.000000e+00> : vector<8x256xf32>
    %62 = tpu.matmul %61, %9, %cst_31 {dimension_numbers = #tpu.dot_dimension_numbers<[1], [0], [0], [1], [0, 0, 1, 1], [], []>} : vector<8x128xbf16>, vector<128x256xbf16>, vector<8x256xf32> -> vector<8x256xf32>
    %63 = arith.addf %60, %62 : vector<8x256xf32>
    %64 = vector.extract_strided_slice %63 {offsets = [0, 0], sizes = [8, 128], strides = [1, 1]} : vector<8x256xf32> to vector<8x128xf32>
    %65 = arith.truncf %63 : vector<8x256xf32> to vector<8x256xbf16>
    %cst_32 = arith.constant dense<0.000000e+00> : vector<8x128xf32>
    %66 = tpu.matmul %65, %10, %cst_32 {dimension_numbers = #tpu.dot_dimension_numbers<[1], [0], [0], [1], [0, 0, 1, 1], [], []>} : vector<8x256xbf16>, vector<256x128xbf16>, vector<8x128xf32> -> vector<8x128xf32>
    %67 = vector.broadcast %11 : vector<1x128xf32> to vector<8x128xf32>
    %68 = arith.addf %66, %67 : vector<8x128xf32>
    %cst_33 = arith.constant dense<0xFF800000> : vector<8xf32>
    %69 = vector.multi_reduction <maximumf>, %68, %cst_33 [1] : vector<8x128xf32> to vector<8xf32>
    %70 = vector.shape_cast %69 : vector<8xf32> to vector<8x1xf32>
    %71 = vector.broadcast %70 : vector<8x1xf32> to vector<8x128xf32>
    %72 = arith.subf %68, %71 : vector<8x128xf32>
    %73 = math.exp %72 : vector<8x128xf32>
    %cst_34 = arith.constant dense<0.000000e+00> : vector<8xf32>
    %74 = vector.multi_reduction <add>, %73, %cst_34 [1] : vector<8x128xf32> to vector<8xf32>
    %75 = vector.shape_cast %74 : vector<8xf32> to vector<8x1xf32>
    %76 = math.log %75 : vector<8x1xf32>
    %77 = vector.broadcast %76 : vector<8x1xf32> to vector<8x128xf32>
    %78 = arith.subf %72, %77 : vector<8x128xf32>
    %c2 = arith.constant 2 : index
    %c0_35 = arith.constant 0 : index
    %c0_36 = arith.constant 0 : index
    %79 = vector.load %arg9[%c2, %c0_35, %c0_36] : memref<8x8x128xf32, #tpu.memory_space<vmem>>, vector<1x8x128xf32>
    %80 = vector.shape_cast %79 : vector<1x8x128xf32> to vector<8x128xf32>
    %81 = vector.shape_cast %78 : vector<8x128xf32> to vector<1x8x128xf32>
    tpu.vector_store %arg9[%c2, %c0_35, %c0_36], %81 {strides = array<i32>} : memref<8x8x128xf32, #tpu.memory_space<vmem>>, vector<1x8x128xf32>,
    %82 = vector.extract_strided_slice %8 {offsets = [24, 0], sizes = [8, 256], strides = [1, 1]} : vector<64x256xf32> to vector<8x256xf32>
    %83 = arith.addf %82, %5 : vector<8x256xf32>
    %84 = arith.truncf %64 : vector<8x128xf32> to vector<8x128xbf16>
    %cst_37 = arith.constant dense<0.000000e+00> : vector<8x256xf32>
    %85 = tpu.matmul %84, %9, %cst_37 {dimension_numbers = #tpu.dot_dimension_numbers<[1], [0], [0], [1], [0, 0, 1, 1], [], []>} : vector<8x128xbf16>, vector<128x256xbf16>, vector<8x256xf32> -> vector<8x256xf32>
    %86 = arith.addf %83, %85 : vector<8x256xf32>
    %87 = vector.extract_strided_slice %86 {offsets = [0, 0], sizes = [8, 128], strides = [1, 1]} : vector<8x256xf32> to vector<8x128xf32>
    %88 = arith.truncf %86 : vector<8x256xf32> to vector<8x256xbf16>
    %cst_38 = arith.constant dense<0.000000e+00> : vector<8x128xf32>
    %89 = tpu.matmul %88, %10, %cst_38 {dimension_numbers = #tpu.dot_dimension_numbers<[1], [0], [0], [1], [0, 0, 1, 1], [], []>} : vector<8x256xbf16>, vector<256x128xbf16>, vector<8x128xf32> -> vector<8x128xf32>
    %90 = vector.broadcast %11 : vector<1x128xf32> to vector<8x128xf32>
    %91 = arith.addf %89, %90 : vector<8x128xf32>
    %cst_39 = arith.constant dense<0xFF800000> : vector<8xf32>
    %92 = vector.multi_reduction <maximumf>, %91, %cst_39 [1] : vector<8x128xf32> to vector<8xf32>
    %93 = vector.shape_cast %92 : vector<8xf32> to vector<8x1xf32>
    %94 = vector.broadcast %93 : vector<8x1xf32> to vector<8x128xf32>
    %95 = arith.subf %91, %94 : vector<8x128xf32>
    %96 = math.exp %95 : vector<8x128xf32>
    %cst_40 = arith.constant dense<0.000000e+00> : vector<8xf32>
    %97 = vector.multi_reduction <add>, %96, %cst_40 [1] : vector<8x128xf32> to vector<8xf32>
    %98 = vector.shape_cast %97 : vector<8xf32> to vector<8x1xf32>
    %99 = math.log %98 : vector<8x1xf32>
    %100 = vector.broadcast %99 : vector<8x1xf32> to vector<8x128xf32>
    %101 = arith.subf %95, %100 : vector<8x128xf32>
    %c3 = arith.constant 3 : index
    %c0_41 = arith.constant 0 : index
    %c0_42 = arith.constant 0 : index
    %102 = vector.load %arg9[%c3, %c0_41, %c0_42] : memref<8x8x128xf32, #tpu.memory_space<vmem>>, vector<1x8x128xf32>
    %103 = vector.shape_cast %102 : vector<1x8x128xf32> to vector<8x128xf32>
    %104 = vector.shape_cast %101 : vector<8x128xf32> to vector<1x8x128xf32>
    tpu.vector_store %arg9[%c3, %c0_41, %c0_42], %104 {strides = array<i32>} : memref<8x8x128xf32, #tpu.memory_space<vmem>>, vector<1x8x128xf32>,
    %105 = vector.extract_strided_slice %8 {offsets = [32, 0], sizes = [8, 256], strides = [1, 1]} : vector<64x256xf32> to vector<8x256xf32>
    %106 = arith.addf %105, %5 : vector<8x256xf32>
    %107 = arith.truncf %87 : vector<8x128xf32> to vector<8x128xbf16>
    %cst_43 = arith.constant dense<0.000000e+00> : vector<8x256xf32>
    %108 = tpu.matmul %107, %9, %cst_43 {dimension_numbers = #tpu.dot_dimension_numbers<[1], [0], [0], [1], [0, 0, 1, 1], [], []>} : vector<8x128xbf16>, vector<128x256xbf16>, vector<8x256xf32> -> vector<8x256xf32>
    %109 = arith.addf %106, %108 : vector<8x256xf32>
    %110 = vector.extract_strided_slice %109 {offsets = [0, 0], sizes = [8, 128], strides = [1, 1]} : vector<8x256xf32> to vector<8x128xf32>
    %111 = arith.truncf %109 : vector<8x256xf32> to vector<8x256xbf16>
    %cst_44 = arith.constant dense<0.000000e+00> : vector<8x128xf32>
    %112 = tpu.matmul %111, %10, %cst_44 {dimension_numbers = #tpu.dot_dimension_numbers<[1], [0], [0], [1], [0, 0, 1, 1], [], []>} : vector<8x256xbf16>, vector<256x128xbf16>, vector<8x128xf32> -> vector<8x128xf32>
    %113 = vector.broadcast %11 : vector<1x128xf32> to vector<8x128xf32>
    %114 = arith.addf %112, %113 : vector<8x128xf32>
    %cst_45 = arith.constant dense<0xFF800000> : vector<8xf32>
    %115 = vector.multi_reduction <maximumf>, %114, %cst_45 [1] : vector<8x128xf32> to vector<8xf32>
    %116 = vector.shape_cast %115 : vector<8xf32> to vector<8x1xf32>
    %117 = vector.broadcast %116 : vector<8x1xf32> to vector<8x128xf32>
    %118 = arith.subf %114, %117 : vector<8x128xf32>
    %119 = math.exp %118 : vector<8x128xf32>
    %cst_46 = arith.constant dense<0.000000e+00> : vector<8xf32>
    %120 = vector.multi_reduction <add>, %119, %cst_46 [1] : vector<8x128xf32> to vector<8xf32>
    %121 = vector.shape_cast %120 : vector<8xf32> to vector<8x1xf32>
    %122 = math.log %121 : vector<8x1xf32>
    %123 = vector.broadcast %122 : vector<8x1xf32> to vector<8x128xf32>
    %124 = arith.subf %118, %123 : vector<8x128xf32>
    %c4 = arith.constant 4 : index
    %c0_47 = arith.constant 0 : index
    %c0_48 = arith.constant 0 : index
    %125 = vector.load %arg9[%c4, %c0_47, %c0_48] : memref<8x8x128xf32, #tpu.memory_space<vmem>>, vector<1x8x128xf32>
    %126 = vector.shape_cast %125 : vector<1x8x128xf32> to vector<8x128xf32>
    %127 = vector.shape_cast %124 : vector<8x128xf32> to vector<1x8x128xf32>
    tpu.vector_store %arg9[%c4, %c0_47, %c0_48], %127 {strides = array<i32>} : memref<8x8x128xf32, #tpu.memory_space<vmem>>, vector<1x8x128xf32>,
    %128 = vector.extract_strided_slice %8 {offsets = [40, 0], sizes = [8, 256], strides = [1, 1]} : vector<64x256xf32> to vector<8x256xf32>
    %129 = arith.addf %128, %5 : vector<8x256xf32>
    %130 = arith.truncf %110 : vector<8x128xf32> to vector<8x128xbf16>
    %cst_49 = arith.constant dense<0.000000e+00> : vector<8x256xf32>
    %131 = tpu.matmul %130, %9, %cst_49 {dimension_numbers = #tpu.dot_dimension_numbers<[1], [0], [0], [1], [0, 0, 1, 1], [], []>} : vector<8x128xbf16>, vector<128x256xbf16>, vector<8x256xf32> -> vector<8x256xf32>
    %132 = arith.addf %129, %131 : vector<8x256xf32>
    %133 = vector.extract_strided_slice %132 {offsets = [0, 0], sizes = [8, 128], strides = [1, 1]} : vector<8x256xf32> to vector<8x128xf32>
    %134 = arith.truncf %132 : vector<8x256xf32> to vector<8x256xbf16>
    %cst_50 = arith.constant dense<0.000000e+00> : vector<8x128xf32>
    %135 = tpu.matmul %134, %10, %cst_50 {dimension_numbers = #tpu.dot_dimension_numbers<[1], [0], [0], [1], [0, 0, 1, 1], [], []>} : vector<8x256xbf16>, vector<256x128xbf16>, vector<8x128xf32> -> vector<8x128xf32>
    %136 = vector.broadcast %11 : vector<1x128xf32> to vector<8x128xf32>
    %137 = arith.addf %135, %136 : vector<8x128xf32>
    %cst_51 = arith.constant dense<0xFF800000> : vector<8xf32>
    %138 = vector.multi_reduction <maximumf>, %137, %cst_51 [1] : vector<8x128xf32> to vector<8xf32>
    %139 = vector.shape_cast %138 : vector<8xf32> to vector<8x1xf32>
    %140 = vector.broadcast %139 : vector<8x1xf32> to vector<8x128xf32>
    %141 = arith.subf %137, %140 : vector<8x128xf32>
    %142 = math.exp %141 : vector<8x128xf32>
    %cst_52 = arith.constant dense<0.000000e+00> : vector<8xf32>
    %143 = vector.multi_reduction <add>, %142, %cst_52 [1] : vector<8x128xf32> to vector<8xf32>
    %144 = vector.shape_cast %143 : vector<8xf32> to vector<8x1xf32>
    %145 = math.log %144 : vector<8x1xf32>
    %146 = vector.broadcast %145 : vector<8x1xf32> to vector<8x128xf32>
    %147 = arith.subf %141, %146 : vector<8x128xf32>
    %c5 = arith.constant 5 : index
    %c0_53 = arith.constant 0 : index
    %c0_54 = arith.constant 0 : index
    %148 = vector.load %arg9[%c5, %c0_53, %c0_54] : memref<8x8x128xf32, #tpu.memory_space<vmem>>, vector<1x8x128xf32>
    %149 = vector.shape_cast %148 : vector<1x8x128xf32> to vector<8x128xf32>
    %150 = vector.shape_cast %147 : vector<8x128xf32> to vector<1x8x128xf32>
    tpu.vector_store %arg9[%c5, %c0_53, %c0_54], %150 {strides = array<i32>} : memref<8x8x128xf32, #tpu.memory_space<vmem>>, vector<1x8x128xf32>,
    %151 = vector.extract_strided_slice %8 {offsets = [48, 0], sizes = [8, 256], strides = [1, 1]} : vector<64x256xf32> to vector<8x256xf32>
    %152 = arith.addf %151, %5 : vector<8x256xf32>
    %153 = arith.truncf %133 : vector<8x128xf32> to vector<8x128xbf16>
    %cst_55 = arith.constant dense<0.000000e+00> : vector<8x256xf32>
    %154 = tpu.matmul %153, %9, %cst_55 {dimension_numbers = #tpu.dot_dimension_numbers<[1], [0], [0], [1], [0, 0, 1, 1], [], []>} : vector<8x128xbf16>, vector<128x256xbf16>, vector<8x256xf32> -> vector<8x256xf32>
    %155 = arith.addf %152, %154 : vector<8x256xf32>
    %156 = vector.extract_strided_slice %155 {offsets = [0, 0], sizes = [8, 128], strides = [1, 1]} : vector<8x256xf32> to vector<8x128xf32>
    %157 = arith.truncf %155 : vector<8x256xf32> to vector<8x256xbf16>
    %cst_56 = arith.constant dense<0.000000e+00> : vector<8x128xf32>
    %158 = tpu.matmul %157, %10, %cst_56 {dimension_numbers = #tpu.dot_dimension_numbers<[1], [0], [0], [1], [0, 0, 1, 1], [], []>} : vector<8x256xbf16>, vector<256x128xbf16>, vector<8x128xf32> -> vector<8x128xf32>
    %159 = vector.broadcast %11 : vector<1x128xf32> to vector<8x128xf32>
    %160 = arith.addf %158, %159 : vector<8x128xf32>
    %cst_57 = arith.constant dense<0xFF800000> : vector<8xf32>
    %161 = vector.multi_reduction <maximumf>, %160, %cst_57 [1] : vector<8x128xf32> to vector<8xf32>
    %162 = vector.shape_cast %161 : vector<8xf32> to vector<8x1xf32>
    %163 = vector.broadcast %162 : vector<8x1xf32> to vector<8x128xf32>
    %164 = arith.subf %160, %163 : vector<8x128xf32>
    %165 = math.exp %164 : vector<8x128xf32>
    %cst_58 = arith.constant dense<0.000000e+00> : vector<8xf32>
    %166 = vector.multi_reduction <add>, %165, %cst_58 [1] : vector<8x128xf32> to vector<8xf32>
    %167 = vector.shape_cast %166 : vector<8xf32> to vector<8x1xf32>
    %168 = math.log %167 : vector<8x1xf32>
    %169 = vector.broadcast %168 : vector<8x1xf32> to vector<8x128xf32>
    %170 = arith.subf %164, %169 : vector<8x128xf32>
    %c6 = arith.constant 6 : index
    %c0_59 = arith.constant 0 : index
    %c0_60 = arith.constant 0 : index
    %171 = vector.load %arg9[%c6, %c0_59, %c0_60] : memref<8x8x128xf32, #tpu.memory_space<vmem>>, vector<1x8x128xf32>
    %172 = vector.shape_cast %171 : vector<1x8x128xf32> to vector<8x128xf32>
    %173 = vector.shape_cast %170 : vector<8x128xf32> to vector<1x8x128xf32>
    tpu.vector_store %arg9[%c6, %c0_59, %c0_60], %173 {strides = array<i32>} : memref<8x8x128xf32, #tpu.memory_space<vmem>>, vector<1x8x128xf32>,
    %174 = vector.extract_strided_slice %8 {offsets = [56, 0], sizes = [8, 256], strides = [1, 1]} : vector<64x256xf32> to vector<8x256xf32>
    %175 = arith.addf %174, %5 : vector<8x256xf32>
    %176 = arith.truncf %156 : vector<8x128xf32> to vector<8x128xbf16>
    %cst_61 = arith.constant dense<0.000000e+00> : vector<8x256xf32>
    %177 = tpu.matmul %176, %9, %cst_61 {dimension_numbers = #tpu.dot_dimension_numbers<[1], [0], [0], [1], [0, 0, 1, 1], [], []>} : vector<8x128xbf16>, vector<128x256xbf16>, vector<8x256xf32> -> vector<8x256xf32>
    %178 = arith.addf %175, %177 : vector<8x256xf32>
    %179 = vector.extract_strided_slice %178 {offsets = [0, 0], sizes = [8, 128], strides = [1, 1]} : vector<8x256xf32> to vector<8x128xf32>
    %180 = arith.truncf %178 : vector<8x256xf32> to vector<8x256xbf16>
    %cst_62 = arith.constant dense<0.000000e+00> : vector<8x128xf32>
    %181 = tpu.matmul %180, %10, %cst_62 {dimension_numbers = #tpu.dot_dimension_numbers<[1], [0], [0], [1], [0, 0, 1, 1], [], []>} : vector<8x256xbf16>, vector<256x128xbf16>, vector<8x128xf32> -> vector<8x128xf32>
    %182 = vector.broadcast %11 : vector<1x128xf32> to vector<8x128xf32>
    %183 = arith.addf %181, %182 : vector<8x128xf32>
    %cst_63 = arith.constant dense<0xFF800000> : vector<8xf32>
    %184 = vector.multi_reduction <maximumf>, %183, %cst_63 [1] : vector<8x128xf32> to vector<8xf32>
    %185 = vector.shape_cast %184 : vector<8xf32> to vector<8x1xf32>
    %186 = vector.broadcast %185 : vector<8x1xf32> to vector<8x128xf32>
    %187 = arith.subf %183, %186 : vector<8x128xf32>
    %188 = math.exp %187 : vector<8x128xf32>
    %cst_64 = arith.constant dense<0.000000e+00> : vector<8xf32>
    %189 = vector.multi_reduction <add>, %188, %cst_64 [1] : vector<8x128xf32> to vector<8xf32>
    %190 = vector.shape_cast %189 : vector<8xf32> to vector<8x1xf32>
    %191 = math.log %190 : vector<8x1xf32>
    %192 = vector.broadcast %191 : vector<8x1xf32> to vector<8x128xf32>
    %193 = arith.subf %187, %192 : vector<8x128xf32>
    %c7 = arith.constant 7 : index
    %c0_65 = arith.constant 0 : index
    %c0_66 = arith.constant 0 : index
    %194 = vector.load %arg9[%c7, %c0_65, %c0_66] : memref<8x8x128xf32, #tpu.memory_space<vmem>>, vector<1x8x128xf32>
    %195 = vector.shape_cast %194 : vector<1x8x128xf32> to vector<8x128xf32>
    %196 = vector.shape_cast %193 : vector<8x128xf32> to vector<1x8x128xf32>
    tpu.vector_store %arg9[%c7, %c0_65, %c0_66], %196 {strides = array<i32>} : memref<8x8x128xf32, #tpu.memory_space<vmem>>, vector<1x8x128xf32>,
    %c0_67 = arith.constant 0 : index
    %c0_68 = arith.constant 0 : index
    %197 = vector.load %arg10[%c0_67, %c0_68] : memref<8x128xf32, #tpu.memory_space<vmem>>, vector<8x128xf32>
    tpu.vector_store %arg10[%c0_67, %c0_68], %179 {strides = array<i32>} : memref<8x128xf32, #tpu.memory_space<vmem>>, vector<8x128xf32>,
    return
  }
}

</mosaic_0001>

<bundles_post_ra>
// kernel: tpu_custom_call.1
= control target key start
LH: loop header
LB: loop body
LE: loop exit
PB: predicated region body
PF: predicated region fallthrough
CT: control target
= control target key end

     0   :  { %16 = vsyncpa [#allocation3], 0  ;;  %s2292_s0 = inlined_call_operand.vmem [shape: bf16[8,8], index: 0, kind: input, shape index: {}]   ;;  %s2293_s1 = inlined_call_operand.vmem [shape: f32[8,128], index: 1, kind: input, shape index: {}]   ;;  %s2294_s2 = inlined_call_operand.vmem [shape: bf16[64,16], index: 2, kind: input, shape index: {}]   ;;  %s2295_s3 = inlined_call_operand.vmem [shape: bf16[8,256], index: 3, kind: input, shape index: {}]   ;;  %s2296_s4 = inlined_call_operand.vmem [shape: bf16[16,256], index: 4, kind: input, shape index: {}]   ;;  %s2297_s5 = inlined_call_operand.hbm [shape: bf16[128,256], index: 5, kind: input, shape index: {}]   ;;  %s2298_s6 = inlined_call_operand.vmem [shape: f32[1,256], index: 6, kind: input, shape index: {}]   ;;  %s2299_s7 = inlined_call_operand.hbm [shape: bf16[256,128], index: 7, kind: input, shape index: {}]   ;;  %s2300_s8 = inlined_call_operand.vmem [shape: f32[1,128], index: 8, kind: input, shape index: {}]   ;;  %s2301_s9 = inlined_call_operand.hbm [shape: f32[8,8,128], index: 9, kind: output, shape index: {0}]   ;;  %s2302_s10 = inlined_call_operand.hbm [shape: f32[8,128], index: 10, kind: output, shape index: {1}]  }
   0x1   :  { %17 = vsyncpa [#allocation6], 0 }
   0x2   :  { %18 = vsyncpa [#allocation4], 0 }
   0x3   :  { %19 = vsyncpa [#allocation9], 0  ;;  %s1728_s13 = smov [#allocation2]   ;;  %s1632_s17 = scalar_lea.hbm %s2297_s5, 2048 }
   0x4   :  { %s35_s14 = sshll.u32 %s1728_s13, 4  ;;  %p1633_p0 = scmp.ne.s32.totalorder %s2297_s5, %s1632_s17  ;;  %s36_s14 = int_to_ptr.vmem [resolvable:$true] %s35_s14 }
   0x5   :  { %p1636_p1 = scmp.lt.u32.totalorder %s1632_s17, %s2297_s5 }
   0x7   :  { %p1638_p2 = pnand %p1636_p1, %p1633_p0 }
   0x9   :  { %1641 = shalt.err (!%p1638_p2)
}
   0xa   :  { %s1642_s22 = scalar_lea.vmem %s36_s14, 2048  ;;  %p1647_p4 = scmp.lt.s32.totalorder %s36_s14, %s36_s14 }
   0xb   :  { %p1643_p3 = scmp.ne.s32.totalorder %s36_s14, %s1642_s22  ;;  %p1648_p5 = scmp.lt.s32.totalorder %s1642_s22, %s1642_s22 }
   0xd   :  { %p1649_p6 = por %p1648_p5, %p1647_p4 }
   0xf   :  { %p1650_p7 = pnand %p1649_p6, %p1643_p3 }
  0x11   :  { %1653 = shalt.err (!%p1650_p7)
}
  0x12   :  { %s1729_s23 = smov 128   ;;  %s1730_s24 = smov 8  }
  0x13   :  { %41 = dma.hbm_to_vmem [thread:$0]  %s2297_s5, 2048, %s36_s14, [#allocation3], %s1729_s23, %s1729_s23, %s1730_s24  }
  0x14   :  { %s1731_s27 = smov [#allocation5]   ;;  %s1654_s11 = scalar_lea.hbm %s2299_s7, 2048 }
  0x15   :  { %s49_s28 = sshll.u32 %s1731_s27, 4  ;;  %p1655_p8 = scmp.ne.s32.totalorder %s2299_s7, %s1654_s11  ;;  %s50_s28 = int_to_ptr.vmem [resolvable:$true] %s49_s28 }
  0x16   :  { %p1658_p9 = scmp.lt.u32.totalorder %s1654_s11, %s2299_s7 }
  0x18   :  { %p1660_p10 = pnand %p1658_p9, %p1655_p8 }
  0x1a   :  { %1663 = shalt.err (!%p1660_p10)
}
  0x1b   :  { %s1664_s17 = scalar_lea.vmem %s50_s28, 2048  ;;  %p1669_p12 = scmp.lt.s32.totalorder %s50_s28, %s50_s28 }
  0x1c   :  { %p1665_p11 = scmp.ne.s32.totalorder %s50_s28, %s1664_s17  ;;  %p1670_p13 = scmp.lt.s32.totalorder %s1664_s17, %s1664_s17 }
  0x1e   :  { %p1671_p0 = por %p1670_p13, %p1669_p12 }
  0x20   :  { %p1672_p1 = pnand %p1671_p0, %p1665_p11 }
  0x22   :  { %1675 = shalt.err (!%p1672_p1)
}
  0x23   :  { %s1732_s5 = smov 64   ;;  %s1733_s14 = smov 4  }
  0x24   :  { %55 = dma.hbm_to_vmem [thread:$0]  %s2299_s7, 2048, %s50_s28, [#allocation6], %s1732_s5, %s1732_s5, %s1733_s14  }
  0x25   :  { %1720 = dma.done.wait [#allocation3], 2048  }
  0x26   :  { %1721 = vsyncadd [#allocation3], 4294965248 }
  0x27   :  { %1722 = dma.done.wait [#allocation6], 2048  }
  0x28   :  { %1723 = vsyncadd [#allocation6], 4294965248  ;;  %v1734_v0 = vmov 0   ;;  %v66_v1 = vld [vmem:[%s2295_s3] sm:$0xff]  ;;  %vm88_vm0 = vcmask 1043456   ;;  %vm84_vm1 = vcmask 64512   ;;  %v69_v46 = vlaneseq }
  0x29   :  { %127 = vmatprep.mubr.bf16.mxu0 %v1734_v0  ;;  %221 = vmatprep.mubr.bf16.mxu1 %v1734_v0  ;;  %v1320_v2 = vcombine.high %v66_v1, %v66_v1  ;;  %v1552_v3 = vld [vmem:[%s2296_s4 + $0x4] ss:$8 sps:$4 sm:$0xff]   ;;  %v1319_v4 = vcombine.low %v66_v1, %v66_v1  ;;  %v1555_v5 = vld [vmem:[%s2296_s4] ss:$8 sps:$4 sm:$0xff]   ;;  %vm176_vm2 = vcmask 130048   ;;  %v1570_v18 = vld [vmem:[%s2294_s2 + $0x10] sm:$0xff]  }
  0x2a   :  { %v65_v6 = vld [vmem:[%s2292_s0] sm:$0xf]  ;;  %189 = vmatprep.subr.bf16.mxu1 %v1552_v3  ;;  %v1836_v9 = vld [vmem:[#allocation2 + $0x4] ss:$8 sps:$4 sm:$0xff]   ;;  %v1841_v11 = vld [vmem:[#allocation2 + $0x14] ss:$8 sps:$4 sm:$0xff]  }
  0x2b   :  { %v1556_v7 = vld [vmem:[%s2294_s2] sm:$0xff]   ;;  %1321 = vmatprep.subr.msk.bf16.mxu0 %vm88_vm0, %v1320_v2  ;;  %v90_v8 = vsel %vm88_vm0, %v1319_v4, 0  ;;  %190 = vmatpush1.bf16.msra.mxu1 %v1555_v5  ;;  %v1845_v12 = vld [vmem:[#allocation2 + $0x10] ss:$8 sps:$4 sm:$0xff]   ;;  %v1563_v14 = vld [vmem:[%s2294_s2 + $0x8] sm:$0xff]   ;;  %v70_v47 = vshrl.u32 %v69_v46, 7 }
  0x2c   :  { %96 = vmatpush1.bf16.msra.mxu0 %v90_v8  ;;  %v1838_v10 = vld [vmem:[#allocation2] ss:$8 sps:$4 sm:$0xff]   ;;  %v1849_v13 = vld [vmem:[#allocation2 + $0x24] ss:$8 sps:$4 sm:$0xff]   ;;  %v1859_v16 = vld [vmem:[#allocation2 + $0x34] ss:$8 sps:$4 sm:$0xff]  }
  0x2d   :  { %395 = vmatprep.subr.bf16.mxu0 %v1836_v9  ;;  %v1856_v15 = vld [vmem:[#allocation2 + $0x20] ss:$8 sps:$4 sm:$0xff]   ;;  %v1863_v17 = vld [vmem:[#allocation2 + $0x30] ss:$8 sps:$4 sm:$0xff]   ;;  %v1870_v19 = vld [vmem:[#allocation2 + $0x44] ss:$8 sps:$4 sm:$0xff]  }
  0x2e   :  { %1329 = vmatmul.mubr.msk.bf16.vlgmr.msra.gmra.mrb[0].mxu1 %vm176_vm2, %v1556_v7  ;;  %v1872_v20 = vld [vmem:[#allocation2 + $0x40] ss:$8 sps:$4 sm:$0xff]   ;;  %v1874_v21 = vld [vmem:[#allocation2 + $0x54] ss:$8 sps:$4 sm:$0xff]   ;;  %v1878_v22 = vld [vmem:[#allocation2 + $0x50] ss:$8 sps:$4 sm:$0xff]  }
  0x2f   :  { %1322 = vmatmul.mubr.msk.bf16.vlgmr.msra.gmra.mrb[0].mxu0 %vm84_vm1, %v65_v6  ;;  %231 = vmatprep.mubr.bf16.mxu1 %v1734_v0  ;;  %v1881_v23 = vld [vmem:[#allocation2 + $0x64] ss:$8 sps:$4 sm:$0xff]   ;;  %v1577_v24 = vld [vmem:[%s2294_s2 + $0x18] sm:$0xff]   ;;  %v1890_v25 = vld [vmem:[#allocation2 + $0x60] ss:$8 sps:$4 sm:$0xff]   ;;  %v71_v48 = vsub.s32 0, %v70_v47 }
  0x30   :  { %396 = vmatpush1.bf16.msra.mxu0 %v1838_v10  ;;  %427 = vmatprep.mubr.bf16.mxu0 %v1734_v0  ;;  %v1893_v26 = vld [vmem:[#allocation2 + $0x74] ss:$8 sps:$4 sm:$0xff]   ;;  %v1897_v27 = vld [vmem:[#allocation2 + $0x70] ss:$8 sps:$4 sm:$0xff]   ;;  %v311_v28 = vld [vmem:[%s2293_s1] sm:$0xff]  ;;  %v75_v50 = vsub.s32 1, %v70_v47 }
  0x31   :  { %397 = vmatprep.subr.bf16.mxu0 %v1841_v11  ;;  %v314_v29 = vpack.c.bf16 %v311_v28, %v311_v28  ;;  %v1922_v30 = vld [vmem:[#allocation5 + $0x40] sm:$0xff]   ;;  %v1928_v32 = vld [vmem:[#allocation5 + $0x48] sm:$0xff]   ;;  %v1933_v34 = vld [vmem:[#allocation5 + $0x50] sm:$0xff]  }
  0x32   :  { %1366 = vmatprep.subr.bf16.mxu1 %v1922_v30  ;;  %v1925_v31 = vld [vmem:[#allocation5] sm:$0xff]   ;;  %v1930_v33 = vld [vmem:[#allocation5 + $0x8] sm:$0xff]   ;;  %v1937_v35 = vld [vmem:[#allocation5 + $0x10] sm:$0xff]  }
  0x33   :  { %1367 = vmatpush3.bf16.msra.mxu1 %v1925_v31  ;;  %v1940_v36 = vld [vmem:[#allocation5 + $0x58] sm:$0xff]   ;;  %v1945_v38 = vld [vmem:[#allocation5 + $0x60] sm:$0xff]   ;;  %v1952_v40 = vld [vmem:[#allocation5 + $0x68] sm:$0xff]  }
  0x34   :  { %398 = vmatpush1.bf16.msra.mxu0 %v1845_v12  ;;  %1368 = vmatprep.subr.bf16.mxu1 %v1928_v32  ;;  %v1942_v37 = vld [vmem:[#allocation5 + $0x18] sm:$0xff]   ;;  %v1949_v39 = vld [vmem:[#allocation5 + $0x20] sm:$0xff]   ;;  %v1954_v41 = vld [vmem:[#allocation5 + $0x28] sm:$0xff]  }
  0x35   :  { %399 = vmatprep.subr.bf16.mxu0 %v1849_v13  ;;  %v1957_v42 = vld [vmem:[#allocation5 + $0x70] sm:$0xff]   ;;  %v1964_v44 = vld [vmem:[#allocation5 + $0x78] sm:$0xff]   ;;  %v67_v49 = vld [vmem:[%s2298_s6] sm:$0x3] }
  0x36   :  { %1330 = vmatmul.mubr.msk.bf16.gmra.mrb[4].mxu1 %vm176_vm2, %v1563_v14  ;;  %v1961_v43 = vld [vmem:[#allocation5 + $0x30] sm:$0xff]   ;;  %v1966_v45 = vld [vmem:[#allocation5 + $0x38] sm:$0xff]   ;;  %v72_v51 = vrot.slane %v67_v49, %v71_v48  ;;  %v76_v52 = vrot.slane %v67_v49, %v75_v50 }
  0x37   :  { %241 = vmatprep.mubr.bf16.mxu1 %v1734_v0  ;;  %1369 = vmatpush3.bf16.msra.mxu1 %v1930_v33 }
  0x38   :  { %400 = vmatpush1.bf16.msra.mxu0 %v1856_v15  ;;  %1370 = vmatprep.subr.bf16.mxu1 %v1933_v34 }
  0x39   :  { %401 = vmatprep.subr.bf16.mxu0 %v1859_v16 }
  0x3b   :  { %1371 = vmatpush3.bf16.msra.mxu1 %v1937_v35 }
  0x3c   :  { %402 = vmatpush1.bf16.msra.mxu0 %v1863_v17  ;;  %1372 = vmatprep.subr.bf16.mxu1 %v1940_v36 }
  0x3d   :  { %403 = vmatprep.subr.bf16.mxu0 %v1870_v19 }
  0x3e   :  { %1331 = vmatmul.mubr.msk.bf16.gmra.mrb[8].mxu1 %vm176_vm2, %v1570_v18 }
  0x3f   :  { %251 = vmatprep.mubr.bf16.mxu1 %v1734_v0  ;;  %1373 = vmatpush3.bf16.msra.mxu1 %v1942_v37 }
  0x40   :  { %404 = vmatpush1.bf16.msra.mxu0 %v1872_v20  ;;  %1374 = vmatprep.subr.bf16.mxu1 %v1945_v38 }
  0x41   :  { %405 = vmatprep.subr.bf16.mxu0 %v1874_v21 }
  0x43   :  { %1375 = vmatpush3.bf16.msra.mxu1 %v1949_v39 }
  0x44   :  { %406 = vmatpush1.bf16.msra.mxu0 %v1878_v22  ;;  %1376 = vmatprep.subr.bf16.mxu1 %v1952_v40 }
  0x45   :  { %407 = vmatprep.subr.bf16.mxu0 %v1881_v23 }
  0x46   :  { %1332 = vmatmul.mubr.msk.bf16.gmra.mrb[12].mxu1 %vm176_vm2, %v1577_v24 }
  0x47   :  { %1377 = vmatpush3.bf16.msra.mxu1 %v1954_v41 }
  0x48   :  { %408 = vmatpush1.bf16.msra.mxu0 %v1890_v25  ;;  %1378 = vmatprep.subr.bf16.mxu1 %v1957_v42 }
  0x49   :  { %409 = vmatprep.subr.bf16.mxu0 %v1893_v26 }
  0x4b   :  { %1379 = vmatpush3.bf16.msra.mxu1 %v1961_v43 }
  0x4c   :  { %410 = vmatpush1.bf16.msra.mxu0 %v1897_v27  ;;  %1380 = vmatprep.subr.bf16.mxu1 %v1964_v44 }
  0x4d   :  { %595 = vmatprep.subr.bf16.mxu0 %v1836_v9 }
  0x4f   :  { %428 = vmatmul.mubr.bf16.vlgmr.msra.gmra.mrb[4].mxu0 %v314_v29  ;;  %1381 = vmatpush3.bf16.msra.mxu1 %v1966_v45 }
  0x50   :  { %596 = vmatpush1.bf16.msra.mxu0 %v1838_v10  ;;  %627 = vmatprep.mubr.bf16.mxu0 %v1734_v0 }
  0x51   :  { %597 = vmatprep.subr.bf16.mxu0 %v1841_v11  ;;  %1388 = vmatprep.subr.bf16.mxu1 %v1922_v30 }
  0x54   :  { %598 = vmatpush1.bf16.msra.mxu0 %v1845_v12 }
  0x55   :  { %599 = vmatprep.subr.bf16.mxu0 %v1849_v13 }
  0x58   :  { %600 = vmatpush1.bf16.msra.mxu0 %v1856_v15 }
  0x59   :  { %601 = vmatprep.subr.bf16.mxu0 %v1859_v16 }
  0x5c   :  { %602 = vmatpush1.bf16.msra.mxu0 %v1863_v17 }
  0x5d   :  { %603 = vmatprep.subr.bf16.mxu0 %v1870_v19 }
  0x60   :  { %604 = vmatpush1.bf16.msra.mxu0 %v1872_v20 }
  0x61   :  { %605 = vmatprep.subr.bf16.mxu0 %v1874_v21 }
  0x64   :  { %606 = vmatpush1.bf16.msra.mxu0 %v1878_v22 }
  0x65   :  { %607 = vmatprep.subr.bf16.mxu0 %v1881_v23 }
  0x68   :  { %608 = vmatpush1.bf16.msra.mxu0 %v1890_v25 }
  0x69   :  { %609 = vmatprep.subr.bf16.mxu0 %v1893_v26 }
  0x6c   :  { %610 = vmatpush1.bf16.msra.mxu0 %v1897_v27 }
  0x6d   :  { %694 = vmatprep.subr.bf16.mxu0 %v1836_v9 }
 0x101   :  { %v223_v54 = vpop.f32.mrb[0].mxu1 }
 0x102   :  { %v129_v53 = vpop.f32.mrb[0].mxu0  ;;  %v225_v57 = vpop.f32.mrb[1].mxu1 }
 0x103   :  { %v130_v55 = vadd.f32 %v129_v53, %v72_v51  ;;  %v131_v56 = vpop.f32.mrb[1].mxu0  ;;  %v227_v60 = vpop.f32.mrb[2].mxu1 }
 0x104   :  { %v132_v58 = vadd.f32 %v131_v56, %v76_v52  ;;  %v133_v59 = vpop.f32.mrb[2].mxu0  ;;  %v229_v1 = vpop.f32.mrb[3].mxu1 }
 0x105   :  { %v312_v61 = vadd.f32 %v223_v54, %v130_v55  ;;  %v1974_v62 = vadd.f32 %v227_v60, %v130_v55  ;;  %v134_v63 = vpop.f32.mrb[3].mxu0 }
 0x106   :  { %v313_v2 = vadd.f32 %v225_v57, %v132_v58  ;;  %v1976_v3 = vadd.f32 %v229_v1, %v132_v58 }
 0x109   :  { %v233_v4 = vpop.f32.mrb[4].mxu1 }
 0x10a   :  { %v1978_v5 = vadd.f32 %v233_v4, %v130_v55  ;;  %v235_v6 = vpop.f32.mrb[5].mxu1 }
 0x10b   :  { %v1980_v7 = vadd.f32 %v235_v6, %v132_v58  ;;  %v237_v8 = vpop.f32.mrb[6].mxu1 }
 0x10c   :  { %v1982_v14 = vadd.f32 %v237_v8, %v130_v55  ;;  %v239_v18 = vpop.f32.mrb[7].mxu1 }
 0x10d   :  { %v1984_v24 = vadd.f32 %v239_v18, %v132_v58 }
 0x111   :  { %v243_v28 = vpop.f32.mrb[8].mxu1 }
 0x112   :  { %v1986_v29 = vadd.f32 %v243_v28, %v130_v55  ;;  %v245_v46 = vpop.f32.mrb[9].mxu1 }
 0x113   :  { %v1988_v47 = vadd.f32 %v245_v46, %v132_v58  ;;  %v247_v48 = vpop.f32.mrb[10].mxu1 }
 0x114   :  { %v1990_v49 = vadd.f32 %v247_v48, %v130_v55  ;;  %v249_v50 = vpop.f32.mrb[11].mxu1 }
 0x115   :  { %v1992_v51 = vadd.f32 %v249_v50, %v132_v58 }
 0x119   :  { %v253_v52 = vpop.f32.mrb[12].mxu1 }
 0x11a   :  { %v1994_v53 = vadd.f32 %v253_v52, %v130_v55  ;;  %v255_v54 = vpop.f32.mrb[13].mxu1 }
 0x11b   :  { %v1996_v56 = vadd.f32 %v255_v54, %v132_v58  ;;  %v257_v57 = vpop.f32.mrb[14].mxu1 }
 0x11c   :  { %v1998_v59 = vadd.f32 %v257_v57, %v130_v55  ;;  %v259_v60 = vpop.f32.mrb[15].mxu1 }
 0x11d   :  { %v2000_v63 = vadd.f32 %v259_v60, %v132_v58 }
 0x122   :  { %v429_v1 = vpop.f32.mrb[4].mxu0 }
 0x123   :  { %v436_v4 = vadd.f32 %v429_v1, %v312_v61  ;;  %v431_v6 = vpop.f32.mrb[5].mxu0  ;;  %v2040_v1 = vld [vmem:[%s2300_s8] ss:$0 sm:$0xff]  ;;  %s1735_s8 = smov [#allocation8]  }
 0x124   :  { %v437_v8 = vadd.f32 %v431_v6, %v313_v2  ;;  %v433_v18 = vpop.f32.mrb[6].mxu0  ;;  %s1305_s5 = sshll.u32 %s1735_s8, 4  ;;  %s1306_s5 = int_to_ptr.vmem [resolvable:$true] %s1305_s5 }
 0x125   :  { %v438_v28 = vpack.c.bf16 %v436_v4, %v436_v4  ;;  %v434_v46 = vpop.f32.mrb[7].mxu0  ;;  %s1676_s14 = scalar_lea.vmem %s1306_s5, 128  ;;  %p1681_p3 = scmp.lt.s32.totalorder %s1306_s5, %s1306_s5 }
 0x126   :  { %v439_v48 = vpack.c.bf16 %v437_v8, %v437_v8  ;;  %p1677_p2 = scmp.ne.s32.totalorder %s1306_s5, %s1676_s14  ;;  %p1682_p4 = scmp.lt.s32.totalorder %s1676_s14, %s1676_s14 }
 0x127   :  { %628 = vmatmul.mubr.bf16.vlgmr.msra.gmra.mrb[8].mxu0 %v438_v28 }
 0x128   :  { %574 = vmatprep.mubr.bf16.mxu1 %v439_v48  ;;  %695 = vmatpush1.bf16.msra.mxu0 %v1838_v10  ;;  %p1683_p5 = por %p1682_p4, %p1681_p3 }
 0x129   :  { %575 = vmatmul.mubr.bf16.vlgmr.msra.gmra.mrb[16].mxu1 %v438_v28  ;;  %696 = vmatprep.subr.bf16.mxu0 %v1841_v11 }
 0x12a   :  { %1389 = vmatpush3.bf16.msra.mxu1 %v1925_v31  ;;  %726 = vmatprep.mubr.bf16.mxu0 %v1734_v0  ;;  %p1684_p6 = pnand %p1683_p5, %p1677_p2 }
 0x12b   :  { %1390 = vmatprep.subr.bf16.mxu1 %v1928_v32 }
 0x12c   :  { %697 = vmatpush1.bf16.msra.mxu0 %v1845_v12 }
 0x12d   :  { %698 = vmatprep.subr.bf16.mxu0 %v1849_v13 }
 0x12e   :  { %1391 = vmatpush3.bf16.msra.mxu1 %v1930_v33 }
 0x12f   :  { %1392 = vmatprep.subr.bf16.mxu1 %v1933_v34 }
 0x130   :  { %699 = vmatpush1.bf16.msra.mxu0 %v1856_v15 }
 0x131   :  { %700 = vmatprep.subr.bf16.mxu0 %v1859_v16 }
 0x132   :  { %1393 = vmatpush3.bf16.msra.mxu1 %v1937_v35 }
 0x133   :  { %1394 = vmatprep.subr.bf16.mxu1 %v1940_v36 }
 0x134   :  { %701 = vmatpush1.bf16.msra.mxu0 %v1863_v17 }
 0x135   :  { %702 = vmatprep.subr.bf16.mxu0 %v1870_v19 }
 0x136   :  { %1395 = vmatpush3.bf16.msra.mxu1 %v1942_v37 }
 0x137   :  { %1396 = vmatprep.subr.bf16.mxu1 %v1945_v38 }
 0x138   :  { %703 = vmatpush1.bf16.msra.mxu0 %v1872_v20 }
 0x139   :  { %704 = vmatprep.subr.bf16.mxu0 %v1874_v21 }
 0x13a   :  { %1397 = vmatpush3.bf16.msra.mxu1 %v1949_v39 }
 0x13b   :  { %1398 = vmatprep.subr.bf16.mxu1 %v1952_v40 }
 0x13c   :  { %705 = vmatpush1.bf16.msra.mxu0 %v1878_v22 }
 0x13d   :  { %706 = vmatprep.subr.bf16.mxu0 %v1881_v23 }
 0x13e   :  { %1399 = vmatpush3.bf16.msra.mxu1 %v1954_v41 }
 0x13f   :  { %1400 = vmatprep.subr.bf16.mxu1 %v1957_v42 }
 0x140   :  { %707 = vmatpush1.bf16.msra.mxu0 %v1890_v25 }
 0x141   :  { %708 = vmatprep.subr.bf16.mxu0 %v1893_v26 }
 0x142   :  { %1401 = vmatpush3.bf16.msra.mxu1 %v1961_v43 }
 0x143   :  { %1402 = vmatprep.subr.bf16.mxu1 %v1964_v44 }
 0x144   :  { %709 = vmatpush1.bf16.msra.mxu0 %v1897_v27 }
 0x145   :  { %793 = vmatprep.subr.bf16.mxu0 %v1836_v9 }
 0x146   :  { %1403 = vmatpush3.bf16.msra.mxu1 %v1966_v45 }
 0x147   :  { %1410 = vmatprep.subr.bf16.mxu1 %v1922_v30 }
 0x1fa   :  { %v629_v55 = vpop.f32.mrb[8].mxu0 }
 0x1fb   :  { %v636_v58 = vadd.f32 %v629_v55, %v1974_v62  ;;  %v631_v61 = vpop.f32.mrb[9].mxu0 }
 0x1fc   :  { %v637_v2 = vadd.f32 %v631_v61, %v1976_v3  ;;  %v1382_v50 = vpop.f32.mrb[16].mxu1  ;;  %v633_v52 = vpop.f32.mrb[10].mxu0 }
 0x1fd   :  { %v638_v54 = vpack.c.bf16 %v636_v58, %v636_v58  ;;  %v1383_v57 = vpop.f32.mrb[17].mxu1  ;;  %v634_v60 = vpop.f32.mrb[11].mxu0 }
 0x1fe   :  { %v639_v4 = vpack.c.bf16 %v637_v2, %v637_v2  ;;  %v1384_v6 = vadd.f32 %v1383_v57, %v1382_v50  ;;  %v1385_v8 = vpop.f32.mrb[18].mxu1 }
 0x1ff   :  { %v1386_v18 = vpop.f32.mrb[19].mxu1  ;;  %727 = vmatmul.mubr.bf16.vlgmr.msra.gmra.mrb[12].mxu0 %v638_v54 }
 0x200   :  { %672 = vmatprep.mubr.bf16.mxu1 %v639_v4  ;;  %v2043_v62 = vadd.f32 %v1384_v6, %v2040_v1  ;;  %794 = vmatpush1.bf16.msra.mxu0 %v1838_v10 }
 0x201   :  { %673 = vmatmul.mubr.bf16.vlgmr.msra.gmra.mrb[20].mxu1 %v638_v54  ;;  %795 = vmatprep.subr.bf16.mxu0 %v1841_v11 }
 0x202   :  { %582 = vmax.xlane.f32.xlu0 %v2043_v62  ;;  %1411 = vmatpush3.bf16.msra.mxu1 %v1925_v31 }
 0x203   :  { %1412 = vmatprep.subr.bf16.mxu1 %v1928_v32  ;;  %825 = vmatprep.mubr.bf16.mxu0 %v1734_v0 }
 0x204   :  { %796 = vmatpush1.bf16.msra.mxu0 %v1845_v12 }
 0x205   :  { %797 = vmatprep.subr.bf16.mxu0 %v1849_v13 }
 0x206   :  { %1413 = vmatpush3.bf16.msra.mxu1 %v1930_v33 }
 0x207   :  { %1414 = vmatprep.subr.bf16.mxu1 %v1933_v34 }
 0x208   :  { %798 = vmatpush1.bf16.msra.mxu0 %v1856_v15 }
 0x209   :  { %799 = vmatprep.subr.bf16.mxu0 %v1859_v16 }
 0x20a   :  { %1415 = vmatpush3.bf16.msra.mxu1 %v1937_v35 }
 0x20b   :  { %1416 = vmatprep.subr.bf16.mxu1 %v1940_v36 }
 0x20c   :  { %800 = vmatpush1.bf16.msra.mxu0 %v1863_v17 }
 0x20d   :  { %801 = vmatprep.subr.bf16.mxu0 %v1870_v19 }
 0x20e   :  { %1417 = vmatpush3.bf16.msra.mxu1 %v1942_v37 }
 0x20f   :  { %1418 = vmatprep.subr.bf16.mxu1 %v1945_v38 }
 0x210   :  { %802 = vmatpush1.bf16.msra.mxu0 %v1872_v20 }
 0x211   :  { %803 = vmatprep.subr.bf16.mxu0 %v1874_v21 }
 0x212   :  { %1419 = vmatpush3.bf16.msra.mxu1 %v1949_v39 }
 0x213   :  { %1420 = vmatprep.subr.bf16.mxu1 %v1952_v40 }
 0x214   :  { %804 = vmatpush1.bf16.msra.mxu0 %v1878_v22 }
 0x215   :  { %805 = vmatprep.subr.bf16.mxu0 %v1881_v23 }
 0x216   :  { %1421 = vmatpush3.bf16.msra.mxu1 %v1954_v41 }
 0x217   :  { %1422 = vmatprep.subr.bf16.mxu1 %v1957_v42 }
 0x218   :  { %806 = vmatpush1.bf16.msra.mxu0 %v1890_v25 }
 0x219   :  { %807 = vmatprep.subr.bf16.mxu0 %v1893_v26 }
 0x21a   :  { %1423 = vmatpush3.bf16.msra.mxu1 %v1961_v43 }
 0x21b   :  { %1424 = vmatprep.subr.bf16.mxu1 %v1964_v44 }
 0x21c   :  { %808 = vmatpush1.bf16.msra.mxu0 %v1897_v27 }
 0x21d   :  { %892 = vmatprep.subr.bf16.mxu0 %v1836_v9 }
 0x21e   :  { %1425 = vmatpush3.bf16.msra.mxu1 %v1966_v45 }
 0x21f   :  { %1432 = vmatprep.subr.bf16.mxu1 %v1922_v30 }
 0x2d2   :  { %v728_v3 = vpop.f32.mrb[12].mxu0 }
 0x2d3   :  { %v735_v28 = vadd.f32 %v728_v3, %v1978_v5  ;;  %v730_v46 = vpop.f32.mrb[13].mxu0 }
 0x2d4   :  { %v736_v48 = vadd.f32 %v730_v46, %v1980_v7  ;;  %v1404_v55 = vpop.f32.mrb[20].mxu1  ;;  %v732_v58 = vpop.f32.mrb[14].mxu0 }
 0x2d5   :  { %v737_v61 = vpack.c.bf16 %v735_v28, %v735_v28  ;;  %v1405_v2 = vpop.f32.mrb[21].mxu1  ;;  %v733_v50 = vpop.f32.mrb[15].mxu0 }
 0x2d6   :  { %v738_v52 = vpack.c.bf16 %v736_v48, %v736_v48  ;;  %v1406_v54 = vadd.f32 %v1405_v2, %v1404_v55  ;;  %v1407_v57 = vpop.f32.mrb[22].mxu1 }
 0x2d7   :  { %v1408_v60 = vpop.f32.mrb[23].mxu1  ;;  %826 = vmatmul.mubr.bf16.vlgmr.msra.gmra.mrb[16].mxu0 %v737_v61 }
 0x2d8   :  { %771 = vmatprep.mubr.bf16.mxu1 %v738_v52  ;;  %v2082_v4 = vadd.f32 %v1406_v54, %v2040_v1  ;;  %893 = vmatpush1.bf16.msra.mxu0 %v1838_v10 }
 0x2d9   :  { %772 = vmatmul.mubr.bf16.vlgmr.msra.gmra.mrb[24].mxu1 %v737_v61  ;;  %894 = vmatprep.subr.bf16.mxu0 %v1841_v11 }
 0x2da   :  { %680 = vmax.xlane.f32.xlu0 %v2082_v4  ;;  %1433 = vmatpush3.bf16.msra.mxu1 %v1925_v31 }
 0x2db   :  { %1434 = vmatprep.subr.bf16.mxu1 %v1928_v32  ;;  %924 = vmatprep.mubr.bf16.mxu0 %v1734_v0 }
 0x2dc   :  { %895 = vmatpush1.bf16.msra.mxu0 %v1845_v12 }
 0x2dd   :  { %896 = vmatprep.subr.bf16.mxu0 %v1849_v13 }
 0x2de   :  { %1435 = vmatpush3.bf16.msra.mxu1 %v1930_v33 }
 0x2df   :  { %1436 = vmatprep.subr.bf16.mxu1 %v1933_v34 }
 0x2e0   :  { %897 = vmatpush1.bf16.msra.mxu0 %v1856_v15 }
 0x2e1   :  { %898 = vmatprep.subr.bf16.mxu0 %v1859_v16 }
 0x2e2   :  { %1437 = vmatpush3.bf16.msra.mxu1 %v1937_v35 }
 0x2e3   :  { %1438 = vmatprep.subr.bf16.mxu1 %v1940_v36 }
 0x2e4   :  { %899 = vmatpush1.bf16.msra.mxu0 %v1863_v17 }
 0x2e5   :  { %900 = vmatprep.subr.bf16.mxu0 %v1870_v19 }
 0x2e6   :  { %1439 = vmatpush3.bf16.msra.mxu1 %v1942_v37 }
 0x2e7   :  { %1440 = vmatprep.subr.bf16.mxu1 %v1945_v38 }
 0x2e8   :  { %901 = vmatpush1.bf16.msra.mxu0 %v1872_v20 }
 0x2e9   :  { %902 = vmatprep.subr.bf16.mxu0 %v1874_v21 }
 0x2ea   :  { %1441 = vmatpush3.bf16.msra.mxu1 %v1949_v39 }
 0x2eb   :  { %1442 = vmatprep.subr.bf16.mxu1 %v1952_v40 }
 0x2ec   :  { %903 = vmatpush1.bf16.msra.mxu0 %v1878_v22 }
 0x2ed   :  { %904 = vmatprep.subr.bf16.mxu0 %v1881_v23 }
 0x2ee   :  { %1443 = vmatpush3.bf16.msra.mxu1 %v1954_v41 }
 0x2ef   :  { %1444 = vmatprep.subr.bf16.mxu1 %v1957_v42 }
 0x2f0   :  { %905 = vmatpush1.bf16.msra.mxu0 %v1890_v25 }
 0x2f1   :  { %906 = vmatprep.subr.bf16.mxu0 %v1893_v26 }
 0x2f2   :  { %1445 = vmatpush3.bf16.msra.mxu1 %v1961_v43 }
 0x2f3   :  { %1446 = vmatprep.subr.bf16.mxu1 %v1964_v44 }
 0x2f4   :  { %907 = vmatpush1.bf16.msra.mxu0 %v1897_v27 }
 0x2f5   :  { %991 = vmatprep.subr.bf16.mxu0 %v1836_v9 }
 0x2f6   :  { %1447 = vmatpush3.bf16.msra.mxu1 %v1966_v45 }
 0x2f7   :  { %1454 = vmatprep.subr.bf16.mxu1 %v1922_v30 }
 0x3aa   :  { %v827_v5 = vpop.f32.mrb[16].mxu0 }
 0x3ab   :  { %v834_v7 = vadd.f32 %v827_v5, %v1982_v14  ;;  %v829_v6 = vpop.f32.mrb[17].mxu0 }
 0x3ac   :  { %v835_v8 = vadd.f32 %v829_v6, %v1984_v24  ;;  %v1426_v18 = vpop.f32.mrb[24].mxu1  ;;  %v831_v3 = vpop.f32.mrb[18].mxu0 }
 0x3ad   :  { %v836_v28 = vpack.c.bf16 %v834_v7, %v834_v7  ;;  %v1427_v46 = vpop.f32.mrb[25].mxu1  ;;  %v832_v48 = vpop.f32.mrb[19].mxu0 }
 0x3ae   :  { %v837_v55 = vpack.c.bf16 %v835_v8, %v835_v8  ;;  %v1428_v58 = vadd.f32 %v1427_v46, %v1426_v18  ;;  %v1429_v61 = vpop.f32.mrb[26].mxu1 }
 0x3af   :  { %v1430_v2 = vpop.f32.mrb[27].mxu1  ;;  %925 = vmatmul.mubr.bf16.vlgmr.msra.gmra.mrb[20].mxu0 %v836_v28 }
 0x3b0   :  { %870 = vmatprep.mubr.bf16.mxu1 %v837_v55  ;;  %v2121_v50 = vadd.f32 %v1428_v58, %v2040_v1  ;;  %992 = vmatpush1.bf16.msra.mxu0 %v1838_v10 }
 0x3b1   :  { %871 = vmatmul.mubr.bf16.vlgmr.msra.gmra.mrb[28].mxu1 %v836_v28  ;;  %993 = vmatprep.subr.bf16.mxu0 %v1841_v11 }
 0x3b2   :  { %779 = vmax.xlane.f32.xlu1 %v2121_v50  ;;  %1455 = vmatpush3.bf16.msra.mxu1 %v1925_v31 }
 0x3b3   :  { %1456 = vmatprep.subr.bf16.mxu1 %v1928_v32  ;;  %1023 = vmatprep.mubr.bf16.mxu0 %v1734_v0 }
 0x3b4   :  { %994 = vmatpush1.bf16.msra.mxu0 %v1845_v12 }
 0x3b5   :  { %995 = vmatprep.subr.bf16.mxu0 %v1849_v13 }
 0x3b6   :  { %1457 = vmatpush3.bf16.msra.mxu1 %v1930_v33 }
 0x3b7   :  { %1458 = vmatprep.subr.bf16.mxu1 %v1933_v34 }
 0x3b8   :  { %996 = vmatpush1.bf16.msra.mxu0 %v1856_v15 }
 0x3b9   :  { %997 = vmatprep.subr.bf16.mxu0 %v1859_v16 }
 0x3ba   :  { %1459 = vmatpush3.bf16.msra.mxu1 %v1937_v35 }
 0x3bb   :  { %1460 = vmatprep.subr.bf16.mxu1 %v1940_v36 }
 0x3bc   :  { %998 = vmatpush1.bf16.msra.mxu0 %v1863_v17 }
 0x3bd   :  { %999 = vmatprep.subr.bf16.mxu0 %v1870_v19 }
 0x3be   :  { %1461 = vmatpush3.bf16.msra.mxu1 %v1942_v37 }
 0x3bf   :  { %1462 = vmatprep.subr.bf16.mxu1 %v1945_v38 }
 0x3c0   :  { %1000 = vmatpush1.bf16.msra.mxu0 %v1872_v20 }
 0x3c1   :  { %1001 = vmatprep.subr.bf16.mxu0 %v1874_v21 }
 0x3c2   :  { %1463 = vmatpush3.bf16.msra.mxu1 %v1949_v39 }
 0x3c3   :  { %1464 = vmatprep.subr.bf16.mxu1 %v1952_v40 }
 0x3c4   :  { %1002 = vmatpush1.bf16.msra.mxu0 %v1878_v22 }
 0x3c5   :  { %1003 = vmatprep.subr.bf16.mxu0 %v1881_v23 }
 0x3c6   :  { %1465 = vmatpush3.bf16.msra.mxu1 %v1954_v41 }
 0x3c7   :  { %1466 = vmatprep.subr.bf16.mxu1 %v1957_v42 }
 0x3c8   :  { %1004 = vmatpush1.bf16.msra.mxu0 %v1890_v25 }
 0x3c9   :  { %1005 = vmatprep.subr.bf16.mxu0 %v1893_v26 }
 0x3ca   :  { %1467 = vmatpush3.bf16.msra.mxu1 %v1961_v43 }
 0x3cb   :  { %1468 = vmatprep.subr.bf16.mxu1 %v1964_v44 }
 0x3cc   :  { %1006 = vmatpush1.bf16.msra.mxu0 %v1897_v27 }
 0x3cd   :  { %1090 = vmatprep.subr.bf16.mxu0 %v1836_v9 }
 0x3ce   :  { %1469 = vmatpush3.bf16.msra.mxu1 %v1966_v45 }
 0x3cf   :  { %1476 = vmatprep.subr.bf16.mxu1 %v1922_v30 }
 0x482   :  { %v926_v14 = vpop.f32.mrb[20].mxu0 }
 0x483   :  { %v933_v24 = vadd.f32 %v926_v14, %v1986_v29  ;;  %v928_v52 = vpop.f32.mrb[21].mxu0 }
 0x484   :  { %v934_v54 = vadd.f32 %v928_v52, %v1988_v47  ;;  %v1448_v57 = vpop.f32.mrb[28].mxu1  ;;  %v930_v60 = vpop.f32.mrb[22].mxu0 }
 0x485   :  { %v935_v5 = vpack.c.bf16 %v933_v24, %v933_v24  ;;  %v1449_v7 = vpop.f32.mrb[29].mxu1  ;;  %v931_v6 = vpop.f32.mrb[23].mxu0 }
 0x486   :  { %v936_v8 = vpack.c.bf16 %v934_v54, %v934_v54  ;;  %v1450_v18 = vadd.f32 %v1449_v7, %v1448_v57  ;;  %v1451_v3 = vpop.f32.mrb[30].mxu1 }
 0x487   :  { %v1452_v28 = vpop.f32.mrb[31].mxu1  ;;  %1024 = vmatmul.mubr.bf16.vlgmr.msra.gmra.mrb[24].mxu0 %v935_v5 }
 0x488   :  { %969 = vmatprep.mubr.bf16.mxu1 %v936_v8  ;;  %v2160_v46 = vadd.f32 %v1450_v18, %v2040_v1  ;;  %1091 = vmatpush1.bf16.msra.mxu0 %v1838_v10 }
 0x489   :  { %970 = vmatmul.mubr.bf16.vlgmr.msra.gmra.mrb[32].mxu1 %v935_v5  ;;  %1092 = vmatprep.subr.bf16.mxu0 %v1841_v11 }
 0x48a   :  { %878 = vmax.xlane.f32.xlu1 %v2160_v46  ;;  %1477 = vmatpush3.bf16.msra.mxu1 %v1925_v31 }
 0x48b   :  { %1478 = vmatprep.subr.bf16.mxu1 %v1928_v32  ;;  %1122 = vmatprep.mubr.bf16.mxu0 %v1734_v0 }
 0x48c   :  { %1093 = vmatpush1.bf16.msra.mxu0 %v1845_v12 }
 0x48d   :  { %1094 = vmatprep.subr.bf16.mxu0 %v1849_v13 }
 0x48e   :  { %1479 = vmatpush3.bf16.msra.mxu1 %v1930_v33 }
 0x48f   :  { %1480 = vmatprep.subr.bf16.mxu1 %v1933_v34 }
 0x490   :  { %1095 = vmatpush1.bf16.msra.mxu0 %v1856_v15 }
 0x491   :  { %1096 = vmatprep.subr.bf16.mxu0 %v1859_v16 }
 0x492   :  { %1481 = vmatpush3.bf16.msra.mxu1 %v1937_v35 }
 0x493   :  { %1482 = vmatprep.subr.bf16.mxu1 %v1940_v36 }
 0x494   :  { %1097 = vmatpush1.bf16.msra.mxu0 %v1863_v17 }
 0x495   :  { %1098 = vmatprep.subr.bf16.mxu0 %v1870_v19 }
 0x496   :  { %1483 = vmatpush3.bf16.msra.mxu1 %v1942_v37 }
 0x497   :  { %1484 = vmatprep.subr.bf16.mxu1 %v1945_v38 }
 0x498   :  { %1099 = vmatpush1.bf16.msra.mxu0 %v1872_v20 }
 0x499   :  { %1100 = vmatprep.subr.bf16.mxu0 %v1874_v21 }
 0x49a   :  { %1485 = vmatpush3.bf16.msra.mxu1 %v1949_v39 }
 0x49b   :  { %1486 = vmatprep.subr.bf16.mxu1 %v1952_v40 }
 0x49c   :  { %1101 = vmatpush1.bf16.msra.mxu0 %v1878_v22 }
 0x49d   :  { %1102 = vmatprep.subr.bf16.mxu0 %v1881_v23 }
 0x49e   :  { %1487 = vmatpush3.bf16.msra.mxu1 %v1954_v41 }
 0x49f   :  { %1488 = vmatprep.subr.bf16.mxu1 %v1957_v42 }
 0x4a0   :  { %1103 = vmatpush1.bf16.msra.mxu0 %v1890_v25 }
 0x4a1   :  { %1104 = vmatprep.subr.bf16.mxu0 %v1893_v26 }
 0x4a2   :  { %1489 = vmatpush3.bf16.msra.mxu1 %v1961_v43 }
 0x4a3   :  { %1490 = vmatprep.subr.bf16.mxu1 %v1964_v44 }
 0x4a4   :  { %1105 = vmatpush1.bf16.msra.mxu0 %v1897_v27 }
 0x4a5   :  { %1189 = vmatprep.subr.bf16.mxu0 %v1836_v9 }
 0x4a6   :  { %1491 = vmatpush3.bf16.msra.mxu1 %v1966_v45 }
 0x4a7   :  { %1498 = vmatprep.subr.bf16.mxu1 %v1922_v30 }
 0x55a   :  { %v1025_v29 = vpop.f32.mrb[24].mxu0 }
 0x55b   :  { %v1032_v47 = vadd.f32 %v1025_v29, %v1990_v49  ;;  %v1027_v48 = vpop.f32.mrb[25].mxu0 }
 0x55c   :  { %v1033_v55 = vadd.f32 %v1027_v48, %v1992_v51  ;;  %v1470_v58 = vpop.f32.mrb[32].mxu1  ;;  %v1029_v61 = vpop.f32.mrb[26].mxu0 }
 0x55d   :  { %v1034_v2 = vpack.c.bf16 %v1032_v47, %v1032_v47  ;;  %v1471_v14 = vpop.f32.mrb[33].mxu1  ;;  %v1030_v24 = vpop.f32.mrb[27].mxu0 }
 0x55e   :  { %v1035_v52 = vpack.c.bf16 %v1033_v55, %v1033_v55  ;;  %v1472_v54 = vadd.f32 %v1471_v14, %v1470_v58  ;;  %v1473_v57 = vpop.f32.mrb[34].mxu1 }
 0x55f   :  { %v1474_v60 = vpop.f32.mrb[35].mxu1  ;;  %1123 = vmatmul.mubr.bf16.vlgmr.msra.gmra.mrb[28].mxu0 %v1034_v2 }
 0x560   :  { %1068 = vmatprep.mubr.bf16.mxu1 %v1035_v52  ;;  %v2199_v9 = vadd.f32 %v1472_v54, %v2040_v1  ;;  %1190 = vmatpush1.bf16.msra.mxu0 %v1838_v10 }
 0x561   :  { %1069 = vmatmul.mubr.bf16.vlgmr.msra.gmra.mrb[36].mxu1 %v1034_v2  ;;  %1191 = vmatprep.subr.bf16.mxu0 %v1841_v11 }
 0x562   :  { %977 = vmax.xlane.f32.xlu0 %v2199_v9  ;;  %1499 = vmatpush3.bf16.msra.mxu1 %v1925_v31 }
 0x563   :  { %1500 = vmatprep.subr.bf16.mxu1 %v1928_v32  ;;  %1221 = vmatprep.mubr.bf16.mxu0 %v1734_v0 }
 0x564   :  { %1192 = vmatpush1.bf16.msra.mxu0 %v1845_v12 }
 0x565   :  { %1193 = vmatprep.subr.bf16.mxu0 %v1849_v13 }
 0x566   :  { %1501 = vmatpush3.bf16.msra.mxu1 %v1930_v33 }
 0x567   :  { %1502 = vmatprep.subr.bf16.mxu1 %v1933_v34 }
 0x568   :  { %1194 = vmatpush1.bf16.msra.mxu0 %v1856_v15 }
 0x569   :  { %1195 = vmatprep.subr.bf16.mxu0 %v1859_v16 }
 0x56a   :  { %1503 = vmatpush3.bf16.msra.mxu1 %v1937_v35 }
 0x56b   :  { %1504 = vmatprep.subr.bf16.mxu1 %v1940_v36 }
 0x56c   :  { %1196 = vmatpush1.bf16.msra.mxu0 %v1863_v17 }
 0x56d   :  { %1197 = vmatprep.subr.bf16.mxu0 %v1870_v19 }
 0x56e   :  { %1505 = vmatpush3.bf16.msra.mxu1 %v1942_v37 }
 0x56f   :  { %1506 = vmatprep.subr.bf16.mxu1 %v1945_v38 }
 0x570   :  { %1198 = vmatpush1.bf16.msra.mxu0 %v1872_v20 }
 0x571   :  { %1199 = vmatprep.subr.bf16.mxu0 %v1874_v21 }
 0x572   :  { %1507 = vmatpush3.bf16.msra.mxu1 %v1949_v39 }
 0x573   :  { %1508 = vmatprep.subr.bf16.mxu1 %v1952_v40 }
 0x574   :  { %1200 = vmatpush1.bf16.msra.mxu0 %v1878_v22 }
 0x575   :  { %1201 = vmatprep.subr.bf16.mxu0 %v1881_v23 }
 0x576   :  { %1509 = vmatpush3.bf16.msra.mxu1 %v1954_v41 }
 0x577   :  { %1510 = vmatprep.subr.bf16.mxu1 %v1957_v42 }
 0x578   :  { %1202 = vmatpush1.bf16.msra.mxu0 %v1890_v25 }
 0x579   :  { %1203 = vmatprep.subr.bf16.mxu0 %v1893_v26  ;;  %v583_v26 = vpop.xlane.xlu0 %582 }
 0x57a   :  { %1511 = vmatpush3.bf16.msra.mxu1 %v1961_v43 }
 0x57b   :  { %1512 = vmatprep.subr.bf16.mxu1 %v1964_v44 }
 0x57c   :  { %1204 = vmatpush1.bf16.msra.mxu0 %v1897_v27  ;;  %v584_v27 = vsub.f32 %v2043_v62, %v583_v26 }
 0x57e   :  { %1513 = vmatpush3.bf16.msra.mxu1 %v1966_v45 }
 0x57f   :  { %1520 = vmatprep.subr.bf16.mxu1 %v1922_v30  ;;  %v681_v30 = vpop.xlane.xlu0 %680 }
 0x580   :  { %v682_v54 = vsub.f32 %v2082_v4, %v681_v30 }
 0x582   :  { %v683_v60 = vmul.f32 1.442695, %v682_v54 }
 0x632   :  { %v1124_v0 = vpop.f32.mrb[28].mxu0 }
 0x633   :  { %v1131_v10 = vadd.f32 %v1124_v0, %v1994_v53  ;;  %v1126_v11 = vpop.f32.mrb[29].mxu0 }
 0x634   :  { %v1132_v12 = vadd.f32 %v1126_v11, %v1996_v56  ;;  %v1492_v13 = vpop.f32.mrb[36].mxu1  ;;  %v1128_v15 = vpop.f32.mrb[30].mxu0 }
 0x635   :  { %v1133_v16 = vpack.c.bf16 %v1131_v10, %v1131_v10  ;;  %v1493_v17 = vpop.f32.mrb[37].mxu1  ;;  %v1129_v19 = vpop.f32.mrb[31].mxu0 }
 0x636   :  { %v1134_v20 = vpack.c.bf16 %v1132_v12, %v1132_v12  ;;  %v1494_v21 = vadd.f32 %v1493_v17, %v1492_v13  ;;  %v1495_v22 = vpop.f32.mrb[38].mxu1 }
 0x637   :  { %v1496_v23 = vpop.f32.mrb[39].mxu1  ;;  %1222 = vmatmul.mubr.bf16.vlgmr.msra.gmra.mrb[32].mxu0 %v1133_v16 }
 0x638   :  { %1167 = vmatprep.mubr.bf16.mxu1 %v1134_v20  ;;  %v2237_v25 = vadd.f32 %v1494_v21, %v2040_v1 }
 0x639   :  { %1168 = vmatmul.mubr.bf16.vlgmr.msra.gmra.mrb[40].mxu1 %v1133_v16 }
 0x63a   :  { %1076 = vmax.xlane.f32.xlu1 %v2237_v25  ;;  %1521 = vmatpush3.bf16.msra.mxu1 %v1925_v31  ;;  %v780_v31 = vpop.xlane.xlu1 %779 }
 0x63b   :  { %1522 = vmatprep.subr.bf16.mxu1 %v1928_v32  ;;  %v585_v32 = vmul.f32 1.442695, %v584_v27 }
 0x63d   :  { %1600 = vpow2.f32 %v585_v32 }
 0x63e   :  { %1523 = vmatpush3.bf16.msra.mxu1 %v1930_v33  ;;  %v781_v33 = vsub.f32 %v2121_v50, %v780_v31  ;;  %v879_v57 = vpop.xlane.xlu1 %878 }
 0x63f   :  { %1524 = vmatprep.subr.bf16.mxu1 %v1933_v34  ;;  %v978_v34 = vpop.xlane.xlu0 %977 }
 0x642   :  { %1525 = vmatpush3.bf16.msra.mxu1 %v1937_v35 }
 0x643   :  { %1526 = vmatprep.subr.bf16.mxu1 %v1940_v36  ;;  %v782_v36 = vmul.f32 1.442695, %v781_v33 }
 0x645   :  { %1602 = vpow2.f32 %v782_v36 }
 0x646   :  { %1527 = vmatpush3.bf16.msra.mxu1 %v1942_v37  ;;  %v979_v37 = vsub.f32 %v2199_v9, %v978_v34  ;;  %v880_v9 = vsub.f32 %v2160_v46, %v879_v57 }
 0x647   :  { %1528 = vmatprep.subr.bf16.mxu1 %v1945_v38 }
 0x648   :  { %v980_v53 = vmul.f32 1.442695, %v979_v37  ;;  %v881_v10 = vmul.f32 1.442695, %v880_v9 }
 0x64a   :  { %1529 = vmatpush3.bf16.msra.mxu1 %v1949_v39  ;;  %1604 = vpow2.f32 %v980_v53 }
 0x64b   :  { %1530 = vmatprep.subr.bf16.mxu1 %v1952_v40 }
 0x64e   :  { %1531 = vmatpush3.bf16.msra.mxu1 %v1954_v41 }
 0x64f   :  { %1532 = vmatprep.subr.bf16.mxu1 %v1957_v42 }
 0x652   :  { %1533 = vmatpush3.bf16.msra.mxu1 %v1961_v43 }
 0x653   :  { %1534 = vmatprep.subr.bf16.mxu1 %v1964_v44 }
 0x656   :  { %1535 = vmatpush3.bf16.msra.mxu1 %v1966_v45 }
 0x6c7   :  { %v1077_v0 = vpop.xlane.xlu1 %1076 }
 0x6c8   :  { %v1078_v11 = vsub.f32 %v2237_v25, %v1077_v0 }
 0x6ca   :  { %v1079_v17 = vmul.f32 1.442695, %v1078_v11 }
 0x70a   :  { %v1223_v35 = vpop.f32.mrb[32].mxu0 }
 0x70b   :  { %v1230_v38 = vadd.f32 %v1223_v35, %v1998_v59  ;;  %v1225_v39 = vpop.f32.mrb[33].mxu0  ;;  %v1601_v59 = vpop.eup %1600 }
 0x70c   :  { %v1231_v40 = vadd.f32 %v1225_v39, %v2000_v63  ;;  %v1514_v41 = vpop.f32.mrb[40].mxu1  ;;  %v1227_v42 = vpop.f32.mrb[34].mxu0 }
 0x70d   :  { %1286 = vst [vmem:[#allocation8] sm:$0xff] %v1230_v38  ;;  %v1515_v43 = vpop.f32.mrb[41].mxu1  ;;  %v1228_v44 = vpop.f32.mrb[35].mxu0  ;;  %v1232_v56 = vpack.c.bf16 %v1230_v38, %v1230_v38 }
 0x70e   :  { %v1233_v45 = vpack.c.bf16 %v1231_v40, %v1231_v40  ;;  %v1516_v49 = vadd.f32 %v1515_v43, %v1514_v41  ;;  %v1517_v51 = vpop.f32.mrb[42].mxu1  ;;  %v1603_v63 = vpop.eup %1602 }
 0x70f   :  { %v1518_v62 = vpop.f32.mrb[43].mxu1  ;;  %v1605_v5 = vpop.eup %1604 }
 0x710   :  { %1266 = vmatprep.mubr.bf16.mxu1 %v1233_v45  ;;  %v1170_v50 = vadd.f32 %v1516_v49, %v2040_v1 }
 0x711   :  { %1267 = vmatmul.mubr.bf16.vlgmr.msra.gmra.mrb[44].mxu1 %v1232_v56 }
 0x712   :  { %1175 = vmax.xlane.f32.xlu0 %v1170_v50 }
 0x716   :  { %587 = vadd.xlane.f32.xlu0 %v1601_v59 }
 0x71a   :  { %784 = vadd.xlane.f32.xlu0 %v1603_v63 }
 0x71e   :  { %982 = vadd.xlane.f32.xlu0 %v1605_v5 }
 0x79f   :  { %v1176_v7 = vpop.xlane.xlu0 %1175 }
 0x7a0   :  { %v1177_v6 = vsub.f32 %v1170_v50, %v1176_v7 }
 0x7a2   :  { %v1178_v8 = vmul.f32 1.442695, %v1177_v6 }
 0x7a3   :  { %v588_v18 = vpop.xlane.xlu0 %587 }
 0x7a4   :  { %1606 = vpow2.f32 %v1178_v8 }
 0x7a5   :  { %1608 = vlog2.f32 %v588_v18 }
 0x7a7   :  { %v785_v3 = vpop.xlane.xlu0 %784 }
 0x7a8   :  { %1610 = vlog2.f32 %v785_v3 }
 0x7ab   :  { %v983_v28 = vpop.xlane.xlu0 %982 }
 0x7ac   :  { %1612 = vlog2.f32 %v983_v28 }
 0x7ad   :  { %1614 = vpow2.f32 %v683_v60 }
 0x7ae   :  { %v1607_v29 = vpop.eup %1606  ;;  %1616 = vpow2.f32 %v881_v10 }
 0x7af   :  { %v1609_v47 = vpop.eup %1608  ;;  %1180 = vadd.xlane.f32.xlu0 %v1607_v29  ;;  %1618 = vpow2.f32 %v1079_v17 }
 0x7b0   :  { %v590_v48 = vmul.f32 0.6931472, %v1609_v47 }
 0x7b2   :  { %v1611_v55 = vpop.eup %1610  ;;  %v591_v58 = vsub.f32 %v584_v27, %v590_v48 }
 0x7b3   :  { %v787_v61 = vmul.f32 0.6931472, %v1611_v55 }
 0x7b4   :  { %592 = vst [vmem:[#allocation7] sm:$0xff] %v591_v58 }
 0x7b5   :  { %v788_v2 = vsub.f32 %v781_v33, %v787_v61 }
 0x7b6   :  { %v1613_v14 = vpop.eup %1612 }
 0x7b7   :  { %790 = vst [vmem:[#allocation7 + $0x10] sm:$0xff] %v788_v2  ;;  %v985_v24 = vmul.f32 0.6931472, %v1613_v14  ;;  %v1615_v4 = vpop.eup %1614 }
 0x7b8   :  { %v1617_v21 = vpop.eup %1616 }
 0x7b9   :  { %v986_v52 = vsub.f32 %v979_v37, %v985_v24  ;;  %v1619_v46 = vpop.eup %1618 }
 0x7bb   :  { %988 = vst [vmem:[#allocation7 + $0x20] sm:$0xff] %v986_v52 }
 0x7e4   :  { %v1536_v12 = vpop.f32.mrb[44].mxu1 }
 0x7e5   :  { %v1537_v13 = vpop.f32.mrb[45].mxu1 }
 0x7e6   :  { %v1538_v15 = vadd.f32 %v1537_v13, %v1536_v12  ;;  %v1539_v16 = vpop.f32.mrb[46].mxu1 }
 0x7e7   :  { %v1540_v19 = vpop.f32.mrb[47].mxu1 }
 0x7e8   :  { %v1269_v20 = vadd.f32 %v1538_v15, %v2040_v1 }
 0x7ea   :  { %1274 = vmax.xlane.f32.xlu1 %v1269_v20 }
 0x7ee   :  { %685 = vadd.xlane.f32.xlu1 %v1615_v4 }
 0x7f2   :  { %883 = vadd.xlane.f32.xlu1 %v1617_v21 }
 0x7f6   :  { %1081 = vadd.xlane.f32.xlu1 %v1619_v46 }
 0x83c   :  { %v1181_v22 = vpop.xlane.xlu0 %1180 }
 0x83d   :  { %1620 = vlog2.f32 %v1181_v22 }
 0x847   :  { %v1621_v23 = vpop.eup %1620 }
 0x848   :  { %v1183_v25 = vmul.f32 0.6931472, %v1621_v23 }
 0x84a   :  { %v1184_v26 = vsub.f32 %v1177_v6, %v1183_v25 }
 0x84c   :  { %1186 = vst [vmem:[#allocation7 + $0x30] sm:$0xff] %v1184_v26 }
 0x877   :  { %v1275_v27 = vpop.xlane.xlu1 %1274 }
 0x878   :  { %v1276_v30 = vsub.f32 %v1269_v20, %v1275_v27 }
 0x87a   :  { %v1277_v31 = vmul.f32 1.442695, %v1276_v30 }
 0x87b   :  { %v686_v32 = vpop.xlane.xlu1 %685 }
 0x87c   :  { %1622 = vpow2.f32 %v1277_v31 }
 0x87d   :  { %1624 = vlog2.f32 %v686_v32 }
 0x87f   :  { %v884_v1 = vpop.xlane.xlu1 %883 }
 0x880   :  { %1626 = vlog2.f32 %v884_v1 }
 0x883   :  { %v1082_v33 = vpop.xlane.xlu1 %1081 }
 0x884   :  { %1628 = vlog2.f32 %v1082_v33 }
 0x886   :  { %v1623_v34 = vpop.eup %1622 }
 0x887   :  { %v1625_v35 = vpop.eup %1624  ;;  %1279 = vadd.xlane.f32.xlu1 %v1623_v34 }
 0x888   :  { %v688_v36 = vmul.f32 0.6931472, %v1625_v35 }
 0x88a   :  { %v1627_v37 = vpop.eup %1626  ;;  %v689_v38 = vsub.f32 %v682_v54, %v688_v36 }
 0x88b   :  { %v886_v39 = vmul.f32 0.6931472, %v1627_v37 }
 0x88c   :  { %691 = vst [vmem:[#allocation7 + $0x8] sm:$0xff] %v689_v38 }
 0x88d   :  { %v887_v40 = vsub.f32 %v880_v9, %v886_v39 }
 0x88e   :  { %v1629_v41 = vpop.eup %1628 }
 0x88f   :  { %889 = vst [vmem:[#allocation7 + $0x18] sm:$0xff] %v887_v40  ;;  %v1084_v42 = vmul.f32 0.6931472, %v1629_v41 }
 0x891   :  { %v1085_v43 = vsub.f32 %v1078_v11, %v1084_v42 }
 0x893   :  { %1087 = vst [vmem:[#allocation7 + $0x28] sm:$0xff] %v1085_v43 }
 0x894   :  { %1687 = shalt.err (!%p1684_p6)
}
 0x895   :  { %s1688_s20 = scalar_lea.hbm %s2302_s10, 128 }
 0x896   :  { %p1689_p7 = scmp.ne.s32.totalorder %s2302_s10, %s1688_s20  ;;  %p1692_p8 = scmp.lt.u32.totalorder %s1688_s20, %s2302_s10 }
 0x898   :  { %p1694_p9 = pnand %p1692_p8, %p1689_p7 }
 0x89a   :  { %1697 = shalt.err (!%p1694_p9)
}
 0x89b   :  { %1308 = dma.vmem_to_hbm [thread:$0]  %s1306_s5, 128, %s2302_s10, [#allocation9]  }
 0x89c   :  { %s1736_s28 = smov [#allocation7]  }
 0x89d   :  { %s1292_s29 = sshll.u32 %s1736_s28, 4  ;;  %s1293_s29 = int_to_ptr.vmem [resolvable:$true] %s1292_s29 }
 0x89e   :  { %s1698_s30 = scalar_lea.vmem %s1293_s29, 1024  ;;  %p1703_p11 = scmp.lt.s32.totalorder %s1293_s29, %s1293_s29 }
 0x89f   :  { %p1699_p10 = scmp.ne.s32.totalorder %s1293_s29, %s1698_s30  ;;  %p1704_p12 = scmp.lt.s32.totalorder %s1698_s30, %s1698_s30 }
 0x8a1   :  { %p1705_p13 = por %p1704_p12, %p1703_p11 }
 0x8a3   :  { %p1706_p0 = pnand %p1705_p13, %p1699_p10 }
 0x914   :  { %v1280_v44 = vpop.xlane.xlu1 %1279 }
 0x915   :  { %1630 = vlog2.f32 %v1280_v44 }
 0x91f   :  { %v1631_v45 = vpop.eup %1630 }
 0x920   :  { %v1282_v49 = vmul.f32 0.6931472, %v1631_v45 }
 0x922   :  { %v1283_v51 = vsub.f32 %v1276_v30, %v1282_v49 }
 0x924   :  { %1285 = vst [vmem:[#allocation7 + $0x38] sm:$0xff] %v1283_v51 }
 0x925   :  { %1709 = shalt.err (!%p1706_p0)
}
 0x926   :  { %s1710_s10 = scalar_lea.hbm %s2301_s9, 1024 }
 0x927   :  { %p1711_p1 = scmp.ne.s32.totalorder %s2301_s9, %s1710_s10  ;;  %p1714_p2 = scmp.lt.u32.totalorder %s1710_s10, %s2301_s9 }
 0x929   :  { %p1716_p3 = pnand %p1714_p2, %p1711_p1 }
 0x92b   :  { %1719 = shalt.err (!%p1716_p3)
}
 0x92c   :  { %1298 = dma.vmem_to_hbm [thread:$0]  %s1293_s29, 1024, %s2301_s9, [#allocation4], %s1729_s23, %s1729_s23, %s1730_s24  }
 0x92d   :  { %1724 = dma.done.wait [#allocation4], 1024  }
 0x92e   :  { %1725 = vsyncadd [#allocation4], 4294966272 }
 0x92f   :  { %1726 = dma.done.wait [#allocation9], 128  }
 0x930   :  { %1727 = vsyncadd [#allocation9], 4294967168 }
 0x931   :  { %1315 = vsyncpa [#allocation3], 1 }
 0x932   :  { %1316 = vsyncpa [#allocation6], 1 }
 0x933   :  { %1317 = vsyncpa [#allocation4], 1 }
 0x934   :  { %1318 = vsyncpa [#allocation9], 1 }

</bundles_post_ra>
